<compile_context>
chip_gen: v6e
topology: v6e:2x2x1
jax: 0.10.0
libtpu: 0.0.40
codegen_flags: <defaults>
</compile_context>

<pallas_src>
import functools

import jax
import jax.numpy as jnp
from jax.experimental import pallas as pl
from jax.experimental.pallas import tpu as pltpu

HIDDEN = 512
LANE = 128


def _round_up(n, m):
    return (n + m - 1) // m * m


def _cdiv(a, b):
    return -(-a // b)


def _tpu_config():
    """Chip-aware defaults: bf16 epilogue + 1024-row tiles on v6e/v7x, f32 + 512 otherwise."""
    kind = ""
    try:
        kind = (getattr(jax.devices()[0], "device_kind", "") or "").lower()
    except Exception:
        pass
    modern = ("v6" in kind) or ("v7" in kind)
    return {"bf16_epilogue": modern, "block_b": 1024 if modern else 512}


def _choose_batch_tile(batch, block_b):
    """Return (tb, n_tiles). tb is a multiple of 16; >=2 tiles once B > 256 so the
    v7x second TC gets work; padding waste bounded to <16 rows per tile."""
    b16 = _round_up(max(batch, 1), 16)
    if b16 <= 256:
        return b16, 1
    n_tiles = max(2, _cdiv(b16, block_b))
    tb = _round_up(_cdiv(b16, n_tiles), 16)
    return tb, n_tiles


def _make_dqn_kernel(epilogue_dtype):
    """epilogue_dtype: bf16 on v6e/v7x (bf16 VPU), f32 on v5e."""

    def kernel(x_ref,
               w1_ref, b1_ref, w2_ref, b2_ref, w3_ref, b3_ref,
               w4_ref, b4_ref, w5_ref, b5_ref, out_ref):
        def hidden(h, w_ref, b_ref):
            acc = jnp.dot(h, w_ref[...], preferred_element_type=jnp.float32)
            act = jnp.maximum(acc.astype(epilogue_dtype) + b_ref[...], 0.0)
            return act.astype(jnp.bfloat16)  # next MXU pass wants bf16

        h = hidden(x_ref[...], w1_ref, b1_ref)
        h = hidden(h, w2_ref, b2_ref)
        h = hidden(h, w3_ref, b3_ref)
        h = hidden(h, w4_ref, b4_ref)
        # Head: keep the final bias-add in f32 (output dtype is f32).
        out_ref[...] = (jnp.dot(h, w5_ref[...], preferred_element_type=jnp.float32)
                        + b5_ref[...])

    return kernel


@functools.partial(jax.jit, static_argnums=(2, 3, 4, 5))
def _dqn_forward_impl(x, params, num_stocks, output_dim, block_b, bf16_epilogue):
    (w1, b1), (w2, b2), (w3, b3), (w4, b4), (w5, b5) = params
    B, input_dim = x.shape
    out_feat = num_stocks * output_dim
    in_pad = _round_up(input_dim, LANE)
    out_pad = _round_up(out_feat, LANE)

    tb, n_tiles = _choose_batch_tile(B, block_b)
    b_pad = tb * n_tiles

    # Lane + batch padding and the bf16 cast of x all fuse under this jit.
    x_p = jnp.pad(x, ((0, b_pad - B), (0, in_pad - input_dim)))
    x_bf = x_p.astype(jnp.bfloat16)

    w1_p = jnp.pad(w1, ((0, in_pad - input_dim), (0, 0)))
    w5_p = jnp.pad(w5, ((0, 0), (0, out_pad - out_feat)))
    b5_p = jnp.pad(b5, ((0, 0), (0, out_pad - out_feat)))

    epilogue_dtype = jnp.bfloat16 if bf16_epilogue else jnp.float32
    ws = [w.astype(jnp.bfloat16) for w in (w1_p, w2, w3, w4, w5_p)]
    bs = ([b.astype(epilogue_dtype) for b in (b1, b2, b3, b4)]
          + [b5_p.astype(jnp.float32)])

    in_specs = [pl.BlockSpec((tb, in_pad), lambda i: (i, 0))]
    operands = [x_bf]
    for w, b in zip(ws, bs):
        # Constant index_map -> fetched once, VMEM-resident across grid steps.
        in_specs.append(pl.BlockSpec(w.shape, lambda i: (0, 0)))
        in_specs.append(pl.BlockSpec(b.shape, lambda i: (0, 0)))
        operands.extend([w, b])
    out_specs = pl.BlockSpec((tb, out_pad), lambda i: (i, 0))

    flops = 2 * b_pad * (in_pad * HIDDEN + 3 * HIDDEN * HIDDEN + HIDDEN * out_pad)
    bias_bytes = sum(int(b.size) for b in bs[:4]) * (2 if bf16_epilogue else 4)
    bytes_accessed = (int(x_bf.size) * 2
                      + sum(int(w.size) for w in ws) * 2
                      + bias_bytes + int(bs[4].size) * 4
                      + b_pad * out_pad * 4)

    out = pl.pallas_call(
        _make_dqn_kernel(epilogue_dtype),
        out_shape=jax.ShapeDtypeStruct((b_pad, out_pad), jnp.float32),
        grid=(n_tiles,),
        in_specs=in_specs,
        out_specs=out_specs,
        compiler_params=pltpu.CompilerParams(
            dimension_semantics=("parallel",),   # v7x: shard batch tiles over 2 TCs
            vmem_limit_bytes=32 * 1024 * 1024),
        cost_estimate=pl.CostEstimate(
            flops=flops, transcendentals=0, bytes_accessed=bytes_accessed),
    )(*operands)

    # Strip padding, then torch's .view(-1, num_stocks, output_dim).
    return out[:B, :out_feat].reshape(-1, num_stocks, output_dim)


def dqn_forward(x, params, num_stocks, output_dim, *, block_b=None, bf16_epilogue=None):
    """x: [B, input_dim] float32. Returns [B, num_stocks, output_dim] float32."""
    cfg = _tpu_config()
    if block_b is None:
        block_b = cfg["block_b"]
    if bf16_epilogue is None:
        bf16_epilogue = cfg["bf16_epilogue"]
    return _dqn_forward_impl(x, params, num_stocks, output_dim,
                             int(block_b), bool(bf16_epilogue))


def init_params(key, input_dim, output_dim, num_stocks, hidden=HIDDEN):
    """Deterministic init (PyTorch Linear-style). Weights [in, out]; biases [1, out]."""
    dims = [(input_dim, hidden), (hidden, hidden), (hidden, hidden),
            (hidden, hidden), (hidden, output_dim * num_stocks)]
    params = []
    for (fan_in, fan_out) in dims:
        key, kw, kb = jax.random.split(key, 3)
        bound = 1.0 / jnp.sqrt(fan_in)
        w = jax.random.uniform(kw, (fan_in, fan_out), jnp.float32, -bound, bound)
        b = jax.random.uniform(kb, (1, fan_out), jnp.float32, -bound, bound)
        params.append((w, b))
    return params


def reference_forward(x, params, num_stocks, output_dim):
    (w1, b1), (w2, b2), (w3, b3), (w4, b4), (w5, b5) = params
    h = jnp.maximum(x @ w1 + b1, 0.0)
    h = jnp.maximum(h @ w2 + b2, 0.0)
    h = jnp.maximum(h @ w3 + b3, 0.0)
    h = jnp.maximum(h @ w4 + b4, 0.0)
    out = h @ w5 + b5
    return out.reshape(-1, num_stocks, output_dim)


if __name__ == "__main__":
    input_dim = 32
    output_dim = 4
    num_stocks = 3
    batch = 8

    key = jax.random.PRNGKey(0)
    key, kx = jax.random.split(key)
    x = jax.random.normal(kx, (batch, input_dim), jnp.float32)
    params = init_params(key, input_dim, output_dim, num_stocks)

    y = dqn_forward(x, params, num_stocks, output_dim)
    jax.block_until_ready(y)

    y_ref = reference_forward(x, params, num_stocks, output_dim)
    assert y.shape == (batch, num_stocks, output_dim), y.shape
    # Loose tolerance: bf16 MXU operands / bf16 hidden epilogue, f32 accumulation.
    assert jnp.allclose(y, y_ref, atol=5e-2, rtol=5e-2), "mismatch vs reference"

    print("KERNEL_OK")
</pallas_src>

<mosaic_0001>
module attributes {stable_mosaic.version = 11 : i64} {
  func.func @kernel(%arg0: i32, %arg1: memref<16x128xbf16, #tpu.memory_space<vmem>>, %arg2: memref<128x512xbf16, #tpu.memory_space<vmem>>, %arg3: memref<1x512xf32, #tpu.memory_space<vmem>>, %arg4: memref<512x512xbf16, #tpu.memory_space<vmem>>, %arg5: memref<1x512xf32, #tpu.memory_space<vmem>>, %arg6: memref<512x512xbf16, #tpu.memory_space<vmem>>, %arg7: memref<1x512xf32, #tpu.memory_space<vmem>>, %arg8: memref<512x512xbf16, #tpu.memory_space<vmem>>, %arg9: memref<1x512xf32, #tpu.memory_space<vmem>>, %arg10: memref<512x128xbf16, #tpu.memory_space<vmem>>, %arg11: memref<1x128xf32, #tpu.memory_space<vmem>>, %arg12: memref<16x128xf32, #tpu.memory_space<vmem>>) attributes {dimension_semantics = [#tpu.dimension_semantics<parallel>], iteration_bounds = array<i64: 1>, scalar_prefetch = 0 : i64, scratch_operands = 0 : i64, tpu.core_type = #tpu.core_type<tc>, window_params = [{transform_indices = @transform_0, window_bounds = array<i64: 16, 128>}, {pipeline_mode = #tpu.pipeline_mode<synchronous>, transform_indices = @transform_1, window_bounds = array<i64: 128, 512>}, {pipeline_mode = #tpu.pipeline_mode<synchronous>, transform_indices = @transform_2, window_bounds = array<i64: 1, 512>}, {pipeline_mode = #tpu.pipeline_mode<synchronous>, transform_indices = @transform_3, window_bounds = array<i64: 512, 512>}, {pipeline_mode = #tpu.pipeline_mode<synchronous>, transform_indices = @transform_4, window_bounds = array<i64: 1, 512>}, {pipeline_mode = #tpu.pipeline_mode<synchronous>, transform_indices = @transform_5, window_bounds = array<i64: 512, 512>}, {pipeline_mode = #tpu.pipeline_mode<synchronous>, transform_indices = @transform_6, window_bounds = array<i64: 1, 512>}, {pipeline_mode = #tpu.pipeline_mode<synchronous>, transform_indices = @transform_7, window_bounds = array<i64: 512, 512>}, {pipeline_mode = #tpu.pipeline_mode<synchronous>, transform_indices = @transform_8, window_bounds = array<i64: 1, 512>}, {pipeline_mode = #tpu.pipeline_mode<synchronous>, transform_indices = @transform_9, window_bounds = array<i64: 512, 128>}, {pipeline_mode = #tpu.pipeline_mode<synchronous>, transform_indices = @transform_10, window_bounds = array<i64: 1, 128>}, {transform_indices = @transform_11, window_bounds = array<i64: 16, 128>}]} {
    %c0 = arith.constant 0 : index
    %c0_0 = arith.constant 0 : index
    %0 = vector.load %arg1[%c0, %c0_0] : memref<16x128xbf16, #tpu.memory_space<vmem>>, vector<16x128xbf16>
    %c0_1 = arith.constant 0 : index
    %c0_2 = arith.constant 0 : index
    %1 = vector.load %arg2[%c0_1, %c0_2] : memref<128x512xbf16, #tpu.memory_space<vmem>>, vector<128x512xbf16>
    %cst = arith.constant dense<0.000000e+00> : vector<16x512xf32>
    %2 = tpu.matmul %0, %1, %cst {dimension_numbers = #tpu.dot_dimension_numbers<[1], [0], [0], [1], [0, 0, 1, 1], [], []>} : vector<16x128xbf16>, vector<128x512xbf16>, vector<16x512xf32> -> vector<16x512xf32>
    %c0_3 = arith.constant 0 : index
    %c0_4 = arith.constant 0 : index
    %3 = vector.load %arg3[%c0_3, %c0_4] : memref<1x512xf32, #tpu.memory_space<vmem>>, vector<1x512xf32>
    %4 = vector.broadcast %3 : vector<1x512xf32> to vector<16x512xf32>
    %5 = arith.addf %2, %4 : vector<16x512xf32>
    %cst_5 = arith.constant 0.000000e+00 : f32
    %6 = vector.broadcast %cst_5 : f32 to vector<16x512xf32>
    %7 = arith.maximumf %5, %6 : vector<16x512xf32>
    %8 = arith.truncf %7 : vector<16x512xf32> to vector<16x512xbf16>
    %c0_6 = arith.constant 0 : index
    %c0_7 = arith.constant 0 : index
    %9 = vector.load %arg4[%c0_6, %c0_7] : memref<512x512xbf16, #tpu.memory_space<vmem>>, vector<512x512xbf16>
    %cst_8 = arith.constant dense<0.000000e+00> : vector<16x512xf32>
    %10 = tpu.matmul %8, %9, %cst_8 {dimension_numbers = #tpu.dot_dimension_numbers<[1], [0], [0], [1], [0, 0, 1, 1], [], []>} : vector<16x512xbf16>, vector<512x512xbf16>, vector<16x512xf32> -> vector<16x512xf32>
    %c0_9 = arith.constant 0 : index
    %c0_10 = arith.constant 0 : index
    %11 = vector.load %arg5[%c0_9, %c0_10] : memref<1x512xf32, #tpu.memory_space<vmem>>, vector<1x512xf32>
    %12 = vector.broadcast %11 : vector<1x512xf32> to vector<16x512xf32>
    %13 = arith.addf %10, %12 : vector<16x512xf32>
    %cst_11 = arith.constant 0.000000e+00 : f32
    %14 = vector.broadcast %cst_11 : f32 to vector<16x512xf32>
    %15 = arith.maximumf %13, %14 : vector<16x512xf32>
    %16 = arith.truncf %15 : vector<16x512xf32> to vector<16x512xbf16>
    %c0_12 = arith.constant 0 : index
    %c0_13 = arith.constant 0 : index
    %17 = vector.load %arg6[%c0_12, %c0_13] : memref<512x512xbf16, #tpu.memory_space<vmem>>, vector<512x512xbf16>
    %cst_14 = arith.constant dense<0.000000e+00> : vector<16x512xf32>
    %18 = tpu.matmul %16, %17, %cst_14 {dimension_numbers = #tpu.dot_dimension_numbers<[1], [0], [0], [1], [0, 0, 1, 1], [], []>} : vector<16x512xbf16>, vector<512x512xbf16>, vector<16x512xf32> -> vector<16x512xf32>
    %c0_15 = arith.constant 0 : index
    %c0_16 = arith.constant 0 : index
    %19 = vector.load %arg7[%c0_15, %c0_16] : memref<1x512xf32, #tpu.memory_space<vmem>>, vector<1x512xf32>
    %20 = vector.broadcast %19 : vector<1x512xf32> to vector<16x512xf32>
    %21 = arith.addf %18, %20 : vector<16x512xf32>
    %cst_17 = arith.constant 0.000000e+00 : f32
    %22 = vector.broadcast %cst_17 : f32 to vector<16x512xf32>
    %23 = arith.maximumf %21, %22 : vector<16x512xf32>
    %24 = arith.truncf %23 : vector<16x512xf32> to vector<16x512xbf16>
    %c0_18 = arith.constant 0 : index
    %c0_19 = arith.constant 0 : index
    %25 = vector.load %arg8[%c0_18, %c0_19] : memref<512x512xbf16, #tpu.memory_space<vmem>>, vector<512x512xbf16>
    %cst_20 = arith.constant dense<0.000000e+00> : vector<16x512xf32>
    %26 = tpu.matmul %24, %25, %cst_20 {dimension_numbers = #tpu.dot_dimension_numbers<[1], [0], [0], [1], [0, 0, 1, 1], [], []>} : vector<16x512xbf16>, vector<512x512xbf16>, vector<16x512xf32> -> vector<16x512xf32>
    %c0_21 = arith.constant 0 : index
    %c0_22 = arith.constant 0 : index
    %27 = vector.load %arg9[%c0_21, %c0_22] : memref<1x512xf32, #tpu.memory_space<vmem>>, vector<1x512xf32>
    %28 = vector.broadcast %27 : vector<1x512xf32> to vector<16x512xf32>
    %29 = arith.addf %26, %28 : vector<16x512xf32>
    %cst_23 = arith.constant 0.000000e+00 : f32
    %30 = vector.broadcast %cst_23 : f32 to vector<16x512xf32>
    %31 = arith.maximumf %29, %30 : vector<16x512xf32>
    %32 = arith.truncf %31 : vector<16x512xf32> to vector<16x512xbf16>
    %c0_24 = arith.constant 0 : index
    %c0_25 = arith.constant 0 : index
    %33 = vector.load %arg10[%c0_24, %c0_25] : memref<512x128xbf16, #tpu.memory_space<vmem>>, vector<512x128xbf16>
    %cst_26 = arith.constant dense<0.000000e+00> : vector<16x128xf32>
    %34 = tpu.matmul %32, %33, %cst_26 {dimension_numbers = #tpu.dot_dimension_numbers<[1], [0], [0], [1], [0, 0, 1, 1], [], []>} : vector<16x512xbf16>, vector<512x128xbf16>, vector<16x128xf32> -> vector<16x128xf32>
    %c0_27 = arith.constant 0 : index
    %c0_28 = arith.constant 0 : index
    %35 = vector.load %arg11[%c0_27, %c0_28] : memref<1x128xf32, #tpu.memory_space<vmem>>, vector<1x128xf32>
    %36 = vector.broadcast %35 : vector<1x128xf32> to vector<16x128xf32>
    %37 = arith.addf %34, %36 : vector<16x128xf32>
    %c0_29 = arith.constant 0 : index
    %c0_30 = arith.constant 0 : index
    %38 = vector.load %arg12[%c0_29, %c0_30] : memref<16x128xf32, #tpu.memory_space<vmem>>, vector<16x128xf32>
    tpu.vector_store %arg12[%c0_29, %c0_30], %37 {strides = array<i32>} : memref<16x128xf32, #tpu.memory_space<vmem>>, vector<16x128xf32>,
    return
  }
  func.func @transform_0(%arg0: i32) -> (i32, i32) {
    %c0_i32 = arith.constant 0 : i32
    %c0_i32_0 = arith.constant 0 : i32
    return %arg0, %c0_i32 : i32, i32
  }
  func.func @transform_1(%arg0: i32) -> (i32, i32) {
    %c0_i32 = arith.constant 0 : i32
    %c0_i32_0 = arith.constant 0 : i32
    %c0_i32_1 = arith.constant 0 : i32
    return %c0_i32, %c0_i32_0 : i32, i32
  }
  func.func @transform_2(%arg0: i32) -> (i32, i32) {
    %c0_i32 = arith.constant 0 : i32
    %c0_i32_0 = arith.constant 0 : i32
    %c0_i32_1 = arith.constant 0 : i32
    return %c0_i32, %c0_i32_0 : i32, i32
  }
  func.func @transform_3(%arg0: i32) -> (i32, i32) {
    %c0_i32 = arith.constant 0 : i32
    %c0_i32_0 = arith.constant 0 : i32
    %c0_i32_1 = arith.constant 0 : i32
    return %c0_i32, %c0_i32_0 : i32, i32
  }
  func.func @transform_4(%arg0: i32) -> (i32, i32) {
    %c0_i32 = arith.constant 0 : i32
    %c0_i32_0 = arith.constant 0 : i32
    %c0_i32_1 = arith.constant 0 : i32
    return %c0_i32, %c0_i32_0 : i32, i32
  }
  func.func @transform_5(%arg0: i32) -> (i32, i32) {
    %c0_i32 = arith.constant 0 : i32
    %c0_i32_0 = arith.constant 0 : i32
    %c0_i32_1 = arith.constant 0 : i32
    return %c0_i32, %c0_i32_0 : i32, i32
  }
  func.func @transform_6(%arg0: i32) -> (i32, i32) {
    %c0_i32 = arith.constant 0 : i32
    %c0_i32_0 = arith.constant 0 : i32
    %c0_i32_1 = arith.constant 0 : i32
    return %c0_i32, %c0_i32_0 : i32, i32
  }
  func.func @transform_7(%arg0: i32) -> (i32, i32) {
    %c0_i32 = arith.constant 0 : i32
    %c0_i32_0 = arith.constant 0 : i32
    %c0_i32_1 = arith.constant 0 : i32
    return %c0_i32, %c0_i32_0 : i32, i32
  }
  func.func @transform_8(%arg0: i32) -> (i32, i32) {
    %c0_i32 = arith.constant 0 : i32
    %c0_i32_0 = arith.constant 0 : i32
    %c0_i32_1 = arith.constant 0 : i32
    return %c0_i32, %c0_i32_0 : i32, i32
  }
  func.func @transform_9(%arg0: i32) -> (i32, i32) {
    %c0_i32 = arith.constant 0 : i32
    %c0_i32_0 = arith.constant 0 : i32
    %c0_i32_1 = arith.constant 0 : i32
    return %c0_i32, %c0_i32_0 : i32, i32
  }
  func.func @transform_10(%arg0: i32) -> (i32, i32) {
    %c0_i32 = arith.constant 0 : i32
    %c0_i32_0 = arith.constant 0 : i32
    %c0_i32_1 = arith.constant 0 : i32
    return %c0_i32, %c0_i32_0 : i32, i32
  }
  func.func @transform_11(%arg0: i32) -> (i32, i32) {
    %c0_i32 = arith.constant 0 : i32
    %c0_i32_0 = arith.constant 0 : i32
    return %arg0, %c0_i32 : i32, i32
  }
}

</mosaic_0001>

<bundles_post_ra>
// kernel: _dqn_forward_impl.1
= control target key start
LH: loop header
LB: loop body
LE: loop exit
PB: predicated region body
PF: predicated region fallthrough
CT: control target
= control target key end

     0   :  { %v4784_v1 = vmov 0   ;;  %s6273_s1 = inlined_call_operand.vmem [shape: bf16[128,512], index: 1, kind: input, shape index: {}]   ;;  %s6274_s0 = inlined_call_operand.vmem [shape: bf16[16,128], index: 0, kind: input, shape index: {}]   ;;  %s6275_s3 = inlined_call_operand.vmem [shape: bf16[512,512], index: 3, kind: input, shape index: {}]   ;;  %s6276_s5 = inlined_call_operand.vmem [shape: bf16[512,512], index: 5, kind: input, shape index: {}]   ;;  %s6277_s2 = inlined_call_operand.vmem [shape: f32[1,512], index: 2, kind: input, shape index: {}]   ;;  %s6278_s4 = inlined_call_operand.vmem [shape: f32[1,512], index: 4, kind: input, shape index: {}]   ;;  %s6279_s7 = inlined_call_operand.vmem [shape: bf16[512,512], index: 7, kind: input, shape index: {}]   ;;  %s6280_s6 = inlined_call_operand.vmem [shape: f32[1,512], index: 6, kind: input, shape index: {}]   ;;  %s6281_s9 = inlined_call_operand.vmem [shape: bf16[512,128], index: 9, kind: input, shape index: {}]   ;;  %s6282_s8 = inlined_call_operand.vmem [shape: f32[1,512], index: 8, kind: input, shape index: {}]   ;;  %s6283_s10 = inlined_call_operand.vmem [shape: f32[1,128], index: 10, kind: input, shape index: {}]   ;;  %s6284_s11 = inlined_call_operand.vmem [shape: f32[16,128], index: 11, kind: output, shape index: {}]  }
   0x1   :  { %v4127_v0 = vld [vmem:[%s6273_s1 + $0xe4] ss:$16 sps:$4 sm:$0xff]   ;;  %293 = vmatprep.mubr.bf16.mxu0 %v4784_v1  ;;  %336 = vmatprep.mubr.bf16.mxu1 %v4784_v1  ;;  %v4129_v2 = vld [vmem:[%s6273_s1 + $0xec] ss:$16 sps:$4 sm:$0xff]   ;;  %v4131_v3 = vld [vmem:[%s6273_s1 + $0xe0] ss:$16 sps:$4 sm:$0xff]  }
   0x2   :  { %261 = vmatprep.subr.bf16.mxu0 %v4127_v0  ;;  %v4132_v4 = vld [vmem:[%s6273_s1 + $0xe8] ss:$16 sps:$4 sm:$0xff]   ;;  %304 = vmatprep.subr.bf16.mxu1 %v4129_v2  ;;  %v4133_v5 = vld [vmem:[%s6273_s1 + $0xc4] ss:$16 sps:$4 sm:$0xff]   ;;  %v4135_v6 = vld [vmem:[%s6273_s1 + $0xcc] ss:$16 sps:$4 sm:$0xff]  }
   0x3   :  { %262 = vmatpush1.bf16.msra.mxu0 %v4131_v3  ;;  %305 = vmatpush1.bf16.msra.mxu1 %v4132_v4  ;;  %v4137_v7 = vld [vmem:[%s6273_s1 + $0xc0] ss:$16 sps:$4 sm:$0xff]   ;;  %v4138_v8 = vld [vmem:[%s6273_s1 + $0xc8] ss:$16 sps:$4 sm:$0xff]   ;;  %v4139_v9 = vld [vmem:[%s6273_s1 + $0xa4] ss:$16 sps:$4 sm:$0xff]  }
   0x4   :  { %263 = vmatprep.subr.bf16.mxu0 %v4133_v5  ;;  %306 = vmatprep.subr.bf16.mxu1 %v4135_v6  ;;  %v4141_v10 = vld [vmem:[%s6273_s1 + $0xac] ss:$16 sps:$4 sm:$0xff]   ;;  %v4143_v11 = vld [vmem:[%s6273_s1 + $0xa0] ss:$16 sps:$4 sm:$0xff]   ;;  %v4144_v12 = vld [vmem:[%s6273_s1 + $0xa8] ss:$16 sps:$4 sm:$0xff]  }
   0x5   :  { %v4145_v13 = vld [vmem:[%s6273_s1 + $0x84] ss:$16 sps:$4 sm:$0xff]   ;;  %v4147_v14 = vld [vmem:[%s6273_s1 + $0x8c] ss:$16 sps:$4 sm:$0xff]   ;;  %v4149_v15 = vld [vmem:[%s6273_s1 + $0x80] ss:$16 sps:$4 sm:$0xff]  }
   0x6   :  { %v4150_v16 = vld [vmem:[%s6273_s1 + $0x88] ss:$16 sps:$4 sm:$0xff]   ;;  %v4151_v17 = vld [vmem:[%s6273_s1 + $0x64] ss:$16 sps:$4 sm:$0xff]   ;;  %v4153_v18 = vld [vmem:[%s6273_s1 + $0x6c] ss:$16 sps:$4 sm:$0xff]  }
   0x7   :  { %264 = vmatpush1.bf16.msra.mxu0 %v4137_v7  ;;  %307 = vmatpush1.bf16.msra.mxu1 %v4138_v8  ;;  %v4155_v19 = vld [vmem:[%s6273_s1 + $0x60] ss:$16 sps:$4 sm:$0xff]   ;;  %v4156_v20 = vld [vmem:[%s6273_s1 + $0x68] ss:$16 sps:$4 sm:$0xff]   ;;  %v4157_v21 = vld [vmem:[%s6273_s1 + $0x44] ss:$16 sps:$4 sm:$0xff]  }
   0x8   :  { %265 = vmatprep.subr.bf16.mxu0 %v4139_v9  ;;  %308 = vmatprep.subr.bf16.mxu1 %v4141_v10  ;;  %v4159_v22 = vld [vmem:[%s6273_s1 + $0x4c] ss:$16 sps:$4 sm:$0xff]   ;;  %v4161_v23 = vld [vmem:[%s6273_s1 + $0x40] ss:$16 sps:$4 sm:$0xff]   ;;  %v4162_v24 = vld [vmem:[%s6273_s1 + $0x48] ss:$16 sps:$4 sm:$0xff]  }
   0x9   :  { %v4163_v25 = vld [vmem:[%s6273_s1 + $0x24] ss:$16 sps:$4 sm:$0xff]   ;;  %v4165_v26 = vld [vmem:[%s6273_s1 + $0x2c] ss:$16 sps:$4 sm:$0xff]   ;;  %v4167_v27 = vld [vmem:[%s6273_s1 + $0x20] ss:$16 sps:$4 sm:$0xff]  }
   0xa   :  { %v4168_v28 = vld [vmem:[%s6273_s1 + $0x28] ss:$16 sps:$4 sm:$0xff]   ;;  %v4169_v29 = vld [vmem:[%s6273_s1 + $0x4] ss:$16 sps:$4 sm:$0xff]   ;;  %v4171_v30 = vld [vmem:[%s6273_s1 + $0xc] ss:$16 sps:$4 sm:$0xff]  }
   0xb   :  { %266 = vmatpush1.bf16.msra.mxu0 %v4143_v11  ;;  %309 = vmatpush1.bf16.msra.mxu1 %v4144_v12  ;;  %v4173_v31 = vld [vmem:[%s6273_s1] ss:$16 sps:$4 sm:$0xff]   ;;  %v4174_v32 = vld [vmem:[%s6273_s1 + $0x8] ss:$16 sps:$4 sm:$0xff]   ;;  %v4178_v33 = vld [vmem:[%s6275_s3 + $0xe4] ss:$16 sps:$4 sm:$0xff]  }
   0xc   :  { %267 = vmatprep.subr.bf16.mxu0 %v4145_v13  ;;  %310 = vmatprep.subr.bf16.mxu1 %v4147_v14  ;;  %v4181_v34 = vld [vmem:[%s6275_s3 + $0x2e4] ss:$16 sps:$4 sm:$0xff]   ;;  %v4176_v36 = vld [vmem:[%s6275_s3 + $0xe0] ss:$16 sps:$4 sm:$0xff]  }
   0xd   :  { %v4175_v35 = vld [vmem:[%s6274_s0] sm:$0xff]  }
   0xe   :  { %v4179_v37 = vld [vmem:[%s6275_s3 + $0x2e0] ss:$16 sps:$4 sm:$0xff]   ;;  %v4184_v38 = vld [vmem:[%s6275_s3 + $0xc4] ss:$16 sps:$4 sm:$0xff]  }
   0xf   :  { %268 = vmatpush1.bf16.msra.mxu0 %v4149_v15  ;;  %311 = vmatpush1.bf16.msra.mxu1 %v4150_v16  ;;  %v4187_v39 = vld [vmem:[%s6275_s3 + $0x2c4] ss:$16 sps:$4 sm:$0xff]   ;;  %v4182_v40 = vld [vmem:[%s6275_s3 + $0xc0] ss:$16 sps:$4 sm:$0xff]  }
  0x10   :  { %269 = vmatprep.subr.bf16.mxu0 %v4151_v17  ;;  %312 = vmatprep.subr.bf16.mxu1 %v4153_v18  ;;  %v4185_v41 = vld [vmem:[%s6275_s3 + $0x2c0] ss:$16 sps:$4 sm:$0xff]   ;;  %v4190_v42 = vld [vmem:[%s6275_s3 + $0xa4] ss:$16 sps:$4 sm:$0xff]  }
  0x11   :  { %v4193_v43 = vld [vmem:[%s6275_s3 + $0x2a4] ss:$16 sps:$4 sm:$0xff]   ;;  %v4188_v44 = vld [vmem:[%s6275_s3 + $0xa0] ss:$16 sps:$4 sm:$0xff]  }
  0x12   :  { %v4191_v45 = vld [vmem:[%s6275_s3 + $0x2a0] ss:$16 sps:$4 sm:$0xff]   ;;  %v4196_v46 = vld [vmem:[%s6275_s3 + $0x84] ss:$16 sps:$4 sm:$0xff]  }
  0x13   :  { %270 = vmatpush1.bf16.msra.mxu0 %v4155_v19  ;;  %313 = vmatpush1.bf16.msra.mxu1 %v4156_v20  ;;  %v4199_v47 = vld [vmem:[%s6275_s3 + $0x284] ss:$16 sps:$4 sm:$0xff]   ;;  %v4194_v48 = vld [vmem:[%s6275_s3 + $0x80] ss:$16 sps:$4 sm:$0xff]  }
  0x14   :  { %271 = vmatprep.subr.bf16.mxu0 %v4157_v21  ;;  %314 = vmatprep.subr.bf16.mxu1 %v4159_v22  ;;  %v4197_v49 = vld [vmem:[%s6275_s3 + $0x280] ss:$16 sps:$4 sm:$0xff]   ;;  %v4202_v50 = vld [vmem:[%s6275_s3 + $0x64] ss:$16 sps:$4 sm:$0xff]  }
  0x15   :  { %v4205_v51 = vld [vmem:[%s6275_s3 + $0x264] ss:$16 sps:$4 sm:$0xff]   ;;  %v4200_v52 = vld [vmem:[%s6275_s3 + $0x60] ss:$16 sps:$4 sm:$0xff]  }
  0x16   :  { %v4203_v53 = vld [vmem:[%s6275_s3 + $0x260] ss:$16 sps:$4 sm:$0xff]   ;;  %v4208_v54 = vld [vmem:[%s6275_s3 + $0x44] ss:$16 sps:$4 sm:$0xff]  }
  0x17   :  { %272 = vmatpush1.bf16.msra.mxu0 %v4161_v23  ;;  %315 = vmatpush1.bf16.msra.mxu1 %v4162_v24  ;;  %v4211_v55 = vld [vmem:[%s6275_s3 + $0x244] ss:$16 sps:$4 sm:$0xff]   ;;  %v4206_v56 = vld [vmem:[%s6275_s3 + $0x40] ss:$16 sps:$4 sm:$0xff]  }
  0x18   :  { %273 = vmatprep.subr.bf16.mxu0 %v4163_v25  ;;  %316 = vmatprep.subr.bf16.mxu1 %v4165_v26  ;;  %v4209_v57 = vld [vmem:[%s6275_s3 + $0x240] ss:$16 sps:$4 sm:$0xff]   ;;  %v4214_v58 = vld [vmem:[%s6275_s3 + $0x24] ss:$16 sps:$4 sm:$0xff]  }
  0x19   :  { %v4217_v59 = vld [vmem:[%s6275_s3 + $0x224] ss:$16 sps:$4 sm:$0xff]   ;;  %v4212_v60 = vld [vmem:[%s6275_s3 + $0x20] ss:$16 sps:$4 sm:$0xff]  }
  0x1a   :  { %v4215_v61 = vld [vmem:[%s6275_s3 + $0x220] ss:$16 sps:$4 sm:$0xff]   ;;  %v4220_v62 = vld [vmem:[%s6275_s3 + $0x4] ss:$16 sps:$4 sm:$0xff]  }
  0x1b   :  { %274 = vmatpush1.bf16.msra.mxu0 %v4167_v27  ;;  %317 = vmatpush1.bf16.msra.mxu1 %v4168_v28  ;;  %v4223_v63 = vld [vmem:[%s6275_s3 + $0x204] ss:$16 sps:$4 sm:$0xff]   ;;  %v4218_v0 = vld [vmem:[%s6275_s3] ss:$16 sps:$4 sm:$0xff]  }
  0x1c   :  { %275 = vmatprep.subr.bf16.mxu0 %v4169_v29  ;;  %318 = vmatprep.subr.bf16.mxu1 %v4171_v30  ;;  %v4221_v1 = vld [vmem:[%s6275_s3 + $0x200] ss:$16 sps:$4 sm:$0xff]   ;;  %v4226_v2 = vld [vmem:[%s6275_s3 + $0x1e4] ss:$16 sps:$4 sm:$0xff]  }
  0x1d   :  { %v4229_v3 = vld [vmem:[%s6275_s3 + $0x3e4] ss:$16 sps:$4 sm:$0xff]   ;;  %v4224_v4 = vld [vmem:[%s6275_s3 + $0x1e0] ss:$16 sps:$4 sm:$0xff]  }
  0x1e   :  { %v4227_v5 = vld [vmem:[%s6275_s3 + $0x3e0] ss:$16 sps:$4 sm:$0xff]   ;;  %v4232_v6 = vld [vmem:[%s6275_s3 + $0x1c4] ss:$16 sps:$4 sm:$0xff]  }
  0x1f   :  { %276 = vmatpush1.bf16.msra.mxu0 %v4173_v31  ;;  %319 = vmatpush1.bf16.msra.mxu1 %v4174_v32  ;;  %v4235_v7 = vld [vmem:[%s6275_s3 + $0x3c4] ss:$16 sps:$4 sm:$0xff]   ;;  %v4230_v8 = vld [vmem:[%s6275_s3 + $0x1c0] ss:$16 sps:$4 sm:$0xff]  }
  0x20   :  { %1149 = vmatprep.subr.bf16.mxu0 %v4178_v33  ;;  %1192 = vmatprep.subr.bf16.mxu1 %v4181_v34  ;;  %v4233_v9 = vld [vmem:[%s6275_s3 + $0x3c0] ss:$16 sps:$4 sm:$0xff]   ;;  %v4238_v10 = vld [vmem:[%s6275_s3 + $0x1a4] ss:$16 sps:$4 sm:$0xff]   ;;  %v4274_v34 = vld [vmem:[%s6275_s3 + $0xec] ss:$16 sps:$4 sm:$0xff]  }
  0x21   :  { %v4241_v11 = vld [vmem:[%s6275_s3 + $0x3a4] ss:$16 sps:$4 sm:$0xff]   ;;  %v4236_v12 = vld [vmem:[%s6275_s3 + $0x1a0] ss:$16 sps:$4 sm:$0xff]  }
  0x22   :  { %294 = vmatmul.mubr.bf16.vlgmr.msra.gmra.mxu0 %v4175_v35  ;;  %337 = vmatmul.mubr.bf16.vlgmr.msra.gmra.mxu1 %v4175_v35  ;;  %v4239_v13 = vld [vmem:[%s6275_s3 + $0x3a0] ss:$16 sps:$4 sm:$0xff]   ;;  %v4244_v14 = vld [vmem:[%s6275_s3 + $0x184] ss:$16 sps:$4 sm:$0xff]   ;;  %v4277_v35 = vld [vmem:[%s6275_s3 + $0x2ec] ss:$16 sps:$4 sm:$0xff]  }
  0x23   :  { %1150 = vmatpush1.bf16.msra.mxu0 %v4176_v36  ;;  %1193 = vmatpush1.bf16.msra.mxu1 %v4179_v37  ;;  %v4247_v15 = vld [vmem:[%s6275_s3 + $0x384] ss:$16 sps:$4 sm:$0xff]   ;;  %v4242_v16 = vld [vmem:[%s6275_s3 + $0x180] ss:$16 sps:$4 sm:$0xff]   ;;  %v75_v36 = vlaneseq }
  0x24   :  { %1151 = vmatprep.subr.bf16.mxu0 %v4184_v38  ;;  %1194 = vmatprep.subr.bf16.mxu1 %v4187_v39  ;;  %v4245_v17 = vld [vmem:[%s6275_s3 + $0x380] ss:$16 sps:$4 sm:$0xff]   ;;  %v4250_v18 = vld [vmem:[%s6275_s3 + $0x164] ss:$16 sps:$4 sm:$0xff]  }
  0x25   :  { %v4253_v19 = vld [vmem:[%s6275_s3 + $0x364] ss:$16 sps:$4 sm:$0xff]   ;;  %v4248_v20 = vld [vmem:[%s6275_s3 + $0x160] ss:$16 sps:$4 sm:$0xff]   ;;  %v76_v37 = vshrl.u32 %v75_v36, 7 }
  0x26   :  { %v4251_v21 = vld [vmem:[%s6275_s3 + $0x360] ss:$16 sps:$4 sm:$0xff]   ;;  %v4256_v22 = vld [vmem:[%s6275_s3 + $0x144] ss:$16 sps:$4 sm:$0xff]   ;;  %v4311_v36 = vld [vmem:[%s6275_s3 + $0x228] ss:$16 sps:$4 sm:$0xff]  }
  0x27   :  { %1152 = vmatpush1.bf16.msra.mxu0 %v4182_v40  ;;  %1195 = vmatpush1.bf16.msra.mxu1 %v4185_v41  ;;  %v4259_v23 = vld [vmem:[%s6275_s3 + $0x344] ss:$16 sps:$4 sm:$0xff]   ;;  %v4254_v24 = vld [vmem:[%s6275_s3 + $0x140] ss:$16 sps:$4 sm:$0xff]   ;;  %v5145_v39 = vsub.s32 1, %v76_v37  ;;  %v5147_v40 = vsub.s32 3, %v76_v37 }
  0x28   :  { %1153 = vmatprep.subr.bf16.mxu0 %v4190_v42  ;;  %1196 = vmatprep.subr.bf16.mxu1 %v4193_v43  ;;  %v4257_v25 = vld [vmem:[%s6275_s3 + $0x340] ss:$16 sps:$4 sm:$0xff]   ;;  %v4262_v26 = vld [vmem:[%s6275_s3 + $0x124] ss:$16 sps:$4 sm:$0xff]   ;;  %v5149_v41 = vsub.s32 0, %v76_v37  ;;  %v5151_v42 = vsub.s32 2, %v76_v37 }
  0x29   :  { %v4265_v27 = vld [vmem:[%s6275_s3 + $0x324] ss:$16 sps:$4 sm:$0xff]   ;;  %v4260_v28 = vld [vmem:[%s6275_s3 + $0x120] ss:$16 sps:$4 sm:$0xff]   ;;  %v4316_v37 = vld [vmem:[%s6275_s3 + $0xc] ss:$16 sps:$4 sm:$0xff]  }
  0x2a   :  { %v4263_v29 = vld [vmem:[%s6275_s3 + $0x320] ss:$16 sps:$4 sm:$0xff]   ;;  %v4268_v30 = vld [vmem:[%s6275_s3 + $0x104] ss:$16 sps:$4 sm:$0xff]  }
  0x2b   :  { %1154 = vmatpush1.bf16.msra.mxu0 %v4188_v44  ;;  %1197 = vmatpush1.bf16.msra.mxu1 %v4191_v45  ;;  %v4271_v31 = vld [vmem:[%s6275_s3 + $0x304] ss:$16 sps:$4 sm:$0xff]   ;;  %v4266_v32 = vld [vmem:[%s6275_s3 + $0x100] ss:$16 sps:$4 sm:$0xff]  }
  0x2c   :  { %1155 = vmatprep.subr.bf16.mxu0 %v4196_v46  ;;  %1198 = vmatprep.subr.bf16.mxu1 %v4199_v47  ;;  %v4269_v33 = vld [vmem:[%s6275_s3 + $0x300] ss:$16 sps:$4 sm:$0xff]  }
  0x2d   :  { %v73_v38 = vld [vmem:[%s6277_s2] sm:$0xf] }
  0x2e   :  { %v82_v45 = vrot.slane %v73_v38, %v5145_v39  ;;  %v90_v46 = vrot.slane %v73_v38, %v5147_v40  ;;  %v78_v47 = vrot.slane %v73_v38, %v5149_v41 }
  0x2f   :  { %1156 = vmatpush1.bf16.msra.mxu0 %v4194_v48  ;;  %1199 = vmatpush1.bf16.msra.mxu1 %v4197_v49  ;;  %v86_v48 = vrot.slane %v73_v38, %v5151_v42  ;;  %v4319_v38 = vld [vmem:[%s6275_s3 + $0x20c] ss:$16 sps:$4 sm:$0xff]  }
  0x30   :  { %1157 = vmatprep.subr.bf16.mxu0 %v4202_v50  ;;  %1200 = vmatprep.subr.bf16.mxu1 %v4205_v51 }
  0x33   :  { %1158 = vmatpush1.bf16.msra.mxu0 %v4200_v52  ;;  %1201 = vmatpush1.bf16.msra.mxu1 %v4203_v53 }
  0x34   :  { %1159 = vmatprep.subr.bf16.mxu0 %v4208_v54  ;;  %1202 = vmatprep.subr.bf16.mxu1 %v4211_v55 }
  0x37   :  { %1160 = vmatpush1.bf16.msra.mxu0 %v4206_v56  ;;  %1203 = vmatpush1.bf16.msra.mxu1 %v4209_v57 }
  0x38   :  { %1161 = vmatprep.subr.bf16.mxu0 %v4214_v58  ;;  %1204 = vmatprep.subr.bf16.mxu1 %v4217_v59 }
  0x3b   :  { %1162 = vmatpush1.bf16.msra.mxu0 %v4212_v60  ;;  %1205 = vmatpush1.bf16.msra.mxu1 %v4215_v61 }
  0x3c   :  { %1163 = vmatprep.subr.bf16.mxu0 %v4220_v62  ;;  %1206 = vmatprep.subr.bf16.mxu1 %v4223_v63 }
  0x3f   :  { %1164 = vmatpush1.bf16.msra.mxu0 %v4218_v0  ;;  %1207 = vmatpush1.bf16.msra.mxu1 %v4221_v1 }
  0x40   :  { %1165 = vmatprep.subr.bf16.mxu0 %v4226_v2  ;;  %1208 = vmatprep.subr.bf16.mxu1 %v4229_v3 }
  0x43   :  { %1166 = vmatpush2.bf16.msra.mxu0 %v4224_v4  ;;  %1209 = vmatpush2.bf16.msra.mxu1 %v4227_v5 }
  0x44   :  { %1167 = vmatprep.subr.bf16.mxu0 %v4232_v6  ;;  %1210 = vmatprep.subr.bf16.mxu1 %v4235_v7 }
  0x47   :  { %1168 = vmatpush2.bf16.msra.mxu0 %v4230_v8  ;;  %1211 = vmatpush2.bf16.msra.mxu1 %v4233_v9  ;;  %v4272_v9 = vld [vmem:[%s6275_s3 + $0xe8] ss:$16 sps:$4 sm:$0xff]  }
  0x48   :  { %1169 = vmatprep.subr.bf16.mxu0 %v4238_v10  ;;  %1212 = vmatprep.subr.bf16.mxu1 %v4241_v11  ;;  %v4275_v10 = vld [vmem:[%s6275_s3 + $0x2e8] ss:$16 sps:$4 sm:$0xff]  }
  0x4b   :  { %1170 = vmatpush2.bf16.msra.mxu0 %v4236_v12  ;;  %1213 = vmatpush2.bf16.msra.mxu1 %v4239_v13  ;;  %v4280_v13 = vld [vmem:[%s6275_s3 + $0xcc] ss:$16 sps:$4 sm:$0xff]  }
  0x4c   :  { %1171 = vmatprep.subr.bf16.mxu0 %v4244_v14  ;;  %1214 = vmatprep.subr.bf16.mxu1 %v4247_v15  ;;  %v4283_v14 = vld [vmem:[%s6275_s3 + $0x2cc] ss:$16 sps:$4 sm:$0xff]   ;;  %v4278_v15 = vld [vmem:[%s6275_s3 + $0xc8] ss:$16 sps:$4 sm:$0xff]  }
  0x4f   :  { %1172 = vmatpush2.bf16.msra.mxu0 %v4242_v16  ;;  %1215 = vmatpush2.bf16.msra.mxu1 %v4245_v17  ;;  %v4281_v16 = vld [vmem:[%s6275_s3 + $0x2c8] ss:$16 sps:$4 sm:$0xff]   ;;  %v4286_v17 = vld [vmem:[%s6275_s3 + $0xac] ss:$16 sps:$4 sm:$0xff]  }
  0x50   :  { %1173 = vmatprep.subr.bf16.mxu0 %v4250_v18  ;;  %1216 = vmatprep.subr.bf16.mxu1 %v4253_v19  ;;  %v4289_v18 = vld [vmem:[%s6275_s3 + $0x2ac] ss:$16 sps:$4 sm:$0xff]   ;;  %v4284_v19 = vld [vmem:[%s6275_s3 + $0xa8] ss:$16 sps:$4 sm:$0xff]  }
  0x53   :  { %1174 = vmatpush2.bf16.msra.mxu0 %v4248_v20  ;;  %1217 = vmatpush2.bf16.msra.mxu1 %v4251_v21  ;;  %v4287_v20 = vld [vmem:[%s6275_s3 + $0x2a8] ss:$16 sps:$4 sm:$0xff]   ;;  %v4292_v21 = vld [vmem:[%s6275_s3 + $0x8c] ss:$16 sps:$4 sm:$0xff]  }
  0x54   :  { %1175 = vmatprep.subr.bf16.mxu0 %v4256_v22  ;;  %1218 = vmatprep.subr.bf16.mxu1 %v4259_v23  ;;  %v4295_v22 = vld [vmem:[%s6275_s3 + $0x28c] ss:$16 sps:$4 sm:$0xff]   ;;  %v4290_v23 = vld [vmem:[%s6275_s3 + $0x88] ss:$16 sps:$4 sm:$0xff]  }
  0x57   :  { %1176 = vmatpush2.bf16.msra.mxu0 %v4254_v24  ;;  %1219 = vmatpush2.bf16.msra.mxu1 %v4257_v25  ;;  %v4293_v24 = vld [vmem:[%s6275_s3 + $0x288] ss:$16 sps:$4 sm:$0xff]   ;;  %v4298_v25 = vld [vmem:[%s6275_s3 + $0x6c] ss:$16 sps:$4 sm:$0xff]  }
  0x58   :  { %1177 = vmatprep.subr.bf16.mxu0 %v4262_v26  ;;  %1220 = vmatprep.subr.bf16.mxu1 %v4265_v27  ;;  %v4301_v26 = vld [vmem:[%s6275_s3 + $0x26c] ss:$16 sps:$4 sm:$0xff]   ;;  %v4296_v27 = vld [vmem:[%s6275_s3 + $0x68] ss:$16 sps:$4 sm:$0xff]  }
  0x5b   :  { %1178 = vmatpush2.bf16.msra.mxu0 %v4260_v28  ;;  %1221 = vmatpush2.bf16.msra.mxu1 %v4263_v29  ;;  %v4299_v28 = vld [vmem:[%s6275_s3 + $0x268] ss:$16 sps:$4 sm:$0xff]   ;;  %v4304_v29 = vld [vmem:[%s6275_s3 + $0x4c] ss:$16 sps:$4 sm:$0xff]  }
  0x5c   :  { %1179 = vmatprep.subr.bf16.mxu0 %v4268_v30  ;;  %1222 = vmatprep.subr.bf16.mxu1 %v4271_v31  ;;  %v4307_v30 = vld [vmem:[%s6275_s3 + $0x24c] ss:$16 sps:$4 sm:$0xff]   ;;  %v4302_v31 = vld [vmem:[%s6275_s3 + $0x48] ss:$16 sps:$4 sm:$0xff]  }
  0x5f   :  { %1180 = vmatpush2.bf16.msra.mxu0 %v4266_v32  ;;  %1223 = vmatpush2.bf16.msra.mxu1 %v4269_v33  ;;  %v4305_v32 = vld [vmem:[%s6275_s3 + $0x248] ss:$16 sps:$4 sm:$0xff]   ;;  %v4310_v33 = vld [vmem:[%s6275_s3 + $0x2c] ss:$16 sps:$4 sm:$0xff]  }
  0x60   :  { %1235 = vmatprep.subr.bf16.mxu0 %v4274_v34  ;;  %1278 = vmatprep.subr.bf16.mxu1 %v4277_v35  ;;  %v4313_v34 = vld [vmem:[%s6275_s3 + $0x22c] ss:$16 sps:$4 sm:$0xff]   ;;  %v4308_v35 = vld [vmem:[%s6275_s3 + $0x28] ss:$16 sps:$4 sm:$0xff]  }
  0xe2   :  { %v295_v43 = vpop.f32.mrf.mxu0  ;;  %v338_v44 = vpop.f32.mrf.mxu1 }
  0xe3   :  { %v296_v57 = vadd.f32 %v295_v43, %v78_v47  ;;  %v339_v58 = vadd.f32 %v338_v44, %v86_v48  ;;  %v4314_v43 = vld [vmem:[%s6275_s3 + $0x8] ss:$16 sps:$4 sm:$0xff]  }
  0xe4   :  { %v297_v49 = vpop.f32.mrf.mxu0  ;;  %v340_v50 = vpop.f32.mrf.mxu1  ;;  %v4317_v44 = vld [vmem:[%s6275_s3 + $0x208] ss:$16 sps:$4 sm:$0xff]  }
  0xe5   :  { %v298_v53 = vadd.f32 %v297_v49, %v82_v45  ;;  %v341_v54 = vadd.f32 %v340_v50, %v90_v46  ;;  %v347_v5 = vmax.f32 %v296_v57, 0.0  ;;  %v349_v6 = vmax.f32 %v339_v58, 0.0  ;;  %v4328_v49 = vld [vmem:[%s6275_s3 + $0x1cc] ss:$16 sps:$4 sm:$0xff]  }
  0xe6   :  { %v299_v51 = vpop.f32.mrf.mxu0  ;;  %v342_v52 = vpop.f32.mrf.mxu1  ;;  %v4331_v50 = vld [vmem:[%s6275_s3 + $0x3cc] ss:$16 sps:$4 sm:$0xff]  }
  0xe7   :  { %v300_v55 = vadd.f32 %v299_v51, %v78_v47  ;;  %v343_v56 = vadd.f32 %v342_v52, %v86_v48  ;;  %v348_v1 = vmax.f32 %v298_v53, 0.0  ;;  %v350_v2 = vmax.f32 %v341_v54, 0.0  ;;  %v4320_v47 = vld [vmem:[%s6275_s3 + $0x1e8] ss:$16 sps:$4 sm:$0xff]   ;;  %v4334_v53 = vld [vmem:[%s6275_s3 + $0x1ac] ss:$16 sps:$4 sm:$0xff]  }
  0xe8   :  { %v301_v59 = vpop.f32.mrf.mxu0  ;;  %v344_v60 = vpop.f32.mrf.mxu1  ;;  %v4323_v48 = vld [vmem:[%s6275_s3 + $0x3e8] ss:$16 sps:$4 sm:$0xff]   ;;  %v4337_v54 = vld [vmem:[%s6275_s3 + $0x3ac] ss:$16 sps:$4 sm:$0xff]  }
  0xe9   :  { %v302_v61 = vadd.f32 %v301_v59, %v82_v45  ;;  %v345_v62 = vadd.f32 %v344_v60, %v90_v46  ;;  %v351_v63 = vmax.f32 %v300_v55, 0.0  ;;  %v353_v0 = vmax.f32 %v343_v56, 0.0  ;;  %v4322_v45 = vld [vmem:[%s6275_s3 + $0x1ec] ss:$16 sps:$4 sm:$0xff]   ;;  %v4326_v51 = vld [vmem:[%s6275_s3 + $0x1c8] ss:$16 sps:$4 sm:$0xff]  }
  0xea   :  { %v4325_v46 = vld [vmem:[%s6275_s3 + $0x3ec] ss:$16 sps:$4 sm:$0xff]   ;;  %v4329_v52 = vld [vmem:[%s6275_s3 + $0x3c8] ss:$16 sps:$4 sm:$0xff]  }
  0xeb   :  { %v352_v3 = vmax.f32 %v302_v61, 0.0  ;;  %v354_v4 = vmax.f32 %v345_v62, 0.0  ;;  %v5163_v11 = vpack.c.bf16 %v351_v63, %v347_v5  ;;  %v5165_v12 = vpack.c.bf16 %v353_v0, %v349_v6  ;;  %v4332_v55 = vld [vmem:[%s6275_s3 + $0x1a8] ss:$16 sps:$4 sm:$0xff]   ;;  %v4340_v57 = vld [vmem:[%s6275_s3 + $0x18c] ss:$16 sps:$4 sm:$0xff]  }
  0xec   :  { %v4335_v56 = vld [vmem:[%s6275_s3 + $0x3a8] ss:$16 sps:$4 sm:$0xff]   ;;  %v4343_v58 = vld [vmem:[%s6275_s3 + $0x38c] ss:$16 sps:$4 sm:$0xff]  }
  0xed   :  { %v356_v7 = vpack.c.bf16 %v352_v3, %v348_v1  ;;  %v358_v8 = vpack.c.bf16 %v354_v4, %v350_v2  ;;  %v4338_v59 = vld [vmem:[%s6275_s3 + $0x188] ss:$16 sps:$4 sm:$0xff]   ;;  %v4346_v61 = vld [vmem:[%s6275_s3 + $0x16c] ss:$16 sps:$4 sm:$0xff]  }
  0xee   :  { %v4341_v60 = vld [vmem:[%s6275_s3 + $0x388] ss:$16 sps:$4 sm:$0xff]   ;;  %v4349_v62 = vld [vmem:[%s6275_s3 + $0x36c] ss:$16 sps:$4 sm:$0xff]  }
  0xef   :  { %1181 = vmatprep.mubr.bf16.mxu0 %v356_v7  ;;  %1224 = vmatprep.mubr.bf16.mxu1 %v358_v8  ;;  %v4344_v63 = vld [vmem:[%s6275_s3 + $0x168] ss:$16 sps:$4 sm:$0xff]   ;;  %v4352_v1 = vld [vmem:[%s6275_s3 + $0x14c] ss:$16 sps:$4 sm:$0xff]  }
  0xf0   :  { %1182 = vmatmul.mubr.bf16.vlgmr.msra.gmra.mxu0 %v5163_v11  ;;  %1225 = vmatmul.mubr.bf16.vlgmr.msra.gmra.mxu1 %v5165_v12  ;;  %v4347_v0 = vld [vmem:[%s6275_s3 + $0x368] ss:$16 sps:$4 sm:$0xff]   ;;  %v4355_v2 = vld [vmem:[%s6275_s3 + $0x34c] ss:$16 sps:$4 sm:$0xff]  }
  0xf1   :  { %1236 = vmatpush1.bf16.msra.mxu0 %v4272_v9  ;;  %1279 = vmatpush1.bf16.msra.mxu1 %v4275_v10  ;;  %v4350_v3 = vld [vmem:[%s6275_s3 + $0x148] ss:$16 sps:$4 sm:$0xff]   ;;  %v4358_v5 = vld [vmem:[%s6275_s3 + $0x12c] ss:$16 sps:$4 sm:$0xff]  }
  0xf2   :  { %1267 = vmatprep.mubr.bf16.mxu0 %v356_v7  ;;  %1310 = vmatprep.mubr.bf16.mxu1 %v358_v8  ;;  %v4353_v4 = vld [vmem:[%s6275_s3 + $0x348] ss:$16 sps:$4 sm:$0xff]   ;;  %v4361_v6 = vld [vmem:[%s6275_s3 + $0x32c] ss:$16 sps:$4 sm:$0xff]  }
  0xf3   :  { %1237 = vmatprep.subr.bf16.mxu0 %v4280_v13  ;;  %1280 = vmatprep.subr.bf16.mxu1 %v4283_v14  ;;  %v4356_v7 = vld [vmem:[%s6275_s3 + $0x128] ss:$16 sps:$4 sm:$0xff]   ;;  %v4364_v9 = vld [vmem:[%s6275_s3 + $0x10c] ss:$16 sps:$4 sm:$0xff]  }
  0xf4   :  { %v4359_v8 = vld [vmem:[%s6275_s3 + $0x328] ss:$16 sps:$4 sm:$0xff]   ;;  %v4367_v10 = vld [vmem:[%s6275_s3 + $0x30c] ss:$16 sps:$4 sm:$0xff]  }
  0xf5   :  { %1238 = vmatpush1.bf16.msra.mxu0 %v4278_v15  ;;  %1281 = vmatpush1.bf16.msra.mxu1 %v4281_v16  ;;  %v4362_v13 = vld [vmem:[%s6275_s3 + $0x108] ss:$16 sps:$4 sm:$0xff]   ;;  %v4370_v15 = vld [vmem:[%s6276_s5 + $0xe4] ss:$16 sps:$4 sm:$0xff]   ;;  %v4368_v16 = vld [vmem:[%s6276_s5 + $0xe0] ss:$16 sps:$4 sm:$0xff]  }
  0xf6   :  { %1239 = vmatprep.subr.bf16.mxu0 %v4286_v17  ;;  %1282 = vmatprep.subr.bf16.mxu1 %v4289_v18  ;;  %v4365_v14 = vld [vmem:[%s6275_s3 + $0x308] ss:$16 sps:$4 sm:$0xff]   ;;  %v4373_v17 = vld [vmem:[%s6276_s5 + $0xc4] ss:$16 sps:$4 sm:$0xff]   ;;  %v4371_v18 = vld [vmem:[%s6276_s5 + $0xc0] ss:$16 sps:$4 sm:$0xff]  }
  0xf9   :  { %1240 = vmatpush1.bf16.msra.mxu0 %v4284_v19  ;;  %1283 = vmatpush1.bf16.msra.mxu1 %v4287_v20  ;;  %v4376_v19 = vld [vmem:[%s6276_s5 + $0xa4] ss:$16 sps:$4 sm:$0xff]   ;;  %v4374_v20 = vld [vmem:[%s6276_s5 + $0xa0] ss:$16 sps:$4 sm:$0xff]  }
  0xfa   :  { %1241 = vmatprep.subr.bf16.mxu0 %v4292_v21  ;;  %1284 = vmatprep.subr.bf16.mxu1 %v4295_v22  ;;  %v4382_v21 = vld [vmem:[%s6276_s5 + $0x64] ss:$16 sps:$4 sm:$0xff]   ;;  %v4380_v22 = vld [vmem:[%s6276_s5 + $0x60] ss:$16 sps:$4 sm:$0xff]  }
  0xfd   :  { %1242 = vmatpush1.bf16.msra.mxu0 %v4290_v23  ;;  %1285 = vmatpush1.bf16.msra.mxu1 %v4293_v24  ;;  %v4416_v23 = vld [vmem:[%s6276_s5 + $0x2e0] ss:$16 sps:$4 sm:$0xff]   ;;  %v4418_v24 = vld [vmem:[%s6276_s5 + $0x2e4] ss:$16 sps:$4 sm:$0xff]  }
  0xfe   :  { %1243 = vmatprep.subr.bf16.mxu0 %v4298_v25  ;;  %1286 = vmatprep.subr.bf16.mxu1 %v4301_v26  ;;  %v4385_v25 = vld [vmem:[%s6276_s5 + $0x44] ss:$16 sps:$4 sm:$0xff]   ;;  %v4383_v26 = vld [vmem:[%s6276_s5 + $0x40] ss:$16 sps:$4 sm:$0xff]  }
 0x101   :  { %1244 = vmatpush1.bf16.msra.mxu0 %v4296_v27  ;;  %1287 = vmatpush1.bf16.msra.mxu1 %v4299_v28  ;;  %v4422_v27 = vld [vmem:[%s6276_s5 + $0x2c0] ss:$16 sps:$4 sm:$0xff]   ;;  %v4424_v28 = vld [vmem:[%s6276_s5 + $0x2c4] ss:$16 sps:$4 sm:$0xff]  }
 0x102   :  { %1245 = vmatprep.subr.bf16.mxu0 %v4304_v29  ;;  %1288 = vmatprep.subr.bf16.mxu1 %v4307_v30  ;;  %v4388_v29 = vld [vmem:[%s6276_s5 + $0x24] ss:$16 sps:$4 sm:$0xff]   ;;  %v4386_v30 = vld [vmem:[%s6276_s5 + $0x20] ss:$16 sps:$4 sm:$0xff]  }
 0x105   :  { %1246 = vmatpush1.bf16.msra.mxu0 %v4302_v31  ;;  %1289 = vmatpush1.bf16.msra.mxu1 %v4305_v32  ;;  %v4428_v31 = vld [vmem:[%s6276_s5 + $0x2a0] ss:$16 sps:$4 sm:$0xff]   ;;  %v4430_v32 = vld [vmem:[%s6276_s5 + $0x2a4] ss:$16 sps:$4 sm:$0xff]  }
 0x106   :  { %1247 = vmatprep.subr.bf16.mxu0 %v4310_v33  ;;  %1290 = vmatprep.subr.bf16.mxu1 %v4313_v34  ;;  %v4391_v33 = vld [vmem:[%s6276_s5 + $0x4] ss:$16 sps:$4 sm:$0xff]   ;;  %v4389_v34 = vld [vmem:[%s6276_s5] ss:$16 sps:$4 sm:$0xff]  }
 0x109   :  { %1248 = vmatpush1.bf16.msra.mxu0 %v4308_v35  ;;  %1291 = vmatpush1.bf16.msra.mxu1 %v4311_v36  ;;  %v4434_v35 = vld [vmem:[%s6276_s5 + $0x280] ss:$16 sps:$4 sm:$0xff]   ;;  %v4436_v36 = vld [vmem:[%s6276_s5 + $0x284] ss:$16 sps:$4 sm:$0xff]  }
 0x10a   :  { %1249 = vmatprep.subr.bf16.mxu0 %v4316_v37  ;;  %1292 = vmatprep.subr.bf16.mxu1 %v4319_v38  ;;  %v4394_v37 = vld [vmem:[%s6276_s5 + $0x1e4] ss:$16 sps:$4 sm:$0xff]   ;;  %v4392_v38 = vld [vmem:[%s6276_s5 + $0x1e0] ss:$16 sps:$4 sm:$0xff]  }
 0x10d   :  { %1250 = vmatpush1.bf16.msra.mxu0 %v4314_v43  ;;  %1293 = vmatpush1.bf16.msra.mxu1 %v4317_v44  ;;  %v4440_v43 = vld [vmem:[%s6276_s5 + $0x260] ss:$16 sps:$4 sm:$0xff]   ;;  %v4442_v44 = vld [vmem:[%s6276_s5 + $0x264] ss:$16 sps:$4 sm:$0xff]  }
 0x10e   :  { %1251 = vmatprep.subr.bf16.mxu0 %v4322_v45  ;;  %1294 = vmatprep.subr.bf16.mxu1 %v4325_v46  ;;  %v4397_v45 = vld [vmem:[%s6276_s5 + $0x1c4] ss:$16 sps:$4 sm:$0xff]   ;;  %v4395_v46 = vld [vmem:[%s6276_s5 + $0x1c0] ss:$16 sps:$4 sm:$0xff]  }
 0x111   :  { %1252 = vmatpush2.bf16.msra.mxu0 %v4320_v47  ;;  %1295 = vmatpush2.bf16.msra.mxu1 %v4323_v48  ;;  %v4446_v47 = vld [vmem:[%s6276_s5 + $0x240] ss:$16 sps:$4 sm:$0xff]   ;;  %v4448_v48 = vld [vmem:[%s6276_s5 + $0x244] ss:$16 sps:$4 sm:$0xff]  }
 0x112   :  { %1253 = vmatprep.subr.bf16.mxu0 %v4328_v49  ;;  %1296 = vmatprep.subr.bf16.mxu1 %v4331_v50  ;;  %v4400_v49 = vld [vmem:[%s6276_s5 + $0x1a4] ss:$16 sps:$4 sm:$0xff]   ;;  %v4398_v50 = vld [vmem:[%s6276_s5 + $0x1a0] ss:$16 sps:$4 sm:$0xff]  }
 0x115   :  { %1254 = vmatpush2.bf16.msra.mxu0 %v4326_v51  ;;  %1297 = vmatpush2.bf16.msra.mxu1 %v4329_v52  ;;  %v4452_v51 = vld [vmem:[%s6276_s5 + $0x220] ss:$16 sps:$4 sm:$0xff]   ;;  %v4454_v52 = vld [vmem:[%s6276_s5 + $0x224] ss:$16 sps:$4 sm:$0xff]  }
 0x116   :  { %1255 = vmatprep.subr.bf16.mxu0 %v4334_v53  ;;  %1298 = vmatprep.subr.bf16.mxu1 %v4337_v54  ;;  %v4403_v53 = vld [vmem:[%s6276_s5 + $0x184] ss:$16 sps:$4 sm:$0xff]   ;;  %v4401_v54 = vld [vmem:[%s6276_s5 + $0x180] ss:$16 sps:$4 sm:$0xff]  }
 0x119   :  { %1256 = vmatpush2.bf16.msra.mxu0 %v4332_v55  ;;  %1299 = vmatpush2.bf16.msra.mxu1 %v4335_v56  ;;  %v4458_v55 = vld [vmem:[%s6276_s5 + $0x200] ss:$16 sps:$4 sm:$0xff]   ;;  %v4460_v56 = vld [vmem:[%s6276_s5 + $0x204] ss:$16 sps:$4 sm:$0xff]  }
 0x11a   :  { %1257 = vmatprep.subr.bf16.mxu0 %v4340_v57  ;;  %1300 = vmatprep.subr.bf16.mxu1 %v4343_v58  ;;  %v4406_v57 = vld [vmem:[%s6276_s5 + $0x164] ss:$16 sps:$4 sm:$0xff]   ;;  %v4404_v58 = vld [vmem:[%s6276_s5 + $0x160] ss:$16 sps:$4 sm:$0xff]  }
 0x11d   :  { %1258 = vmatpush2.bf16.msra.mxu0 %v4338_v59  ;;  %1301 = vmatpush2.bf16.msra.mxu1 %v4341_v60  ;;  %v4464_v59 = vld [vmem:[%s6276_s5 + $0x3e0] ss:$16 sps:$4 sm:$0xff]   ;;  %v4466_v60 = vld [vmem:[%s6276_s5 + $0x3e4] ss:$16 sps:$4 sm:$0xff]  }
 0x11e   :  { %1259 = vmatprep.subr.bf16.mxu0 %v4346_v61  ;;  %1302 = vmatprep.subr.bf16.mxu1 %v4349_v62  ;;  %v4409_v61 = vld [vmem:[%s6276_s5 + $0x144] ss:$16 sps:$4 sm:$0xff]   ;;  %v4407_v62 = vld [vmem:[%s6276_s5 + $0x140] ss:$16 sps:$4 sm:$0xff]  }
 0x121   :  { %1260 = vmatpush2.bf16.msra.mxu0 %v4344_v63  ;;  %1303 = vmatpush2.bf16.msra.mxu1 %v4347_v0  ;;  %v4470_v63 = vld [vmem:[%s6276_s5 + $0x3c0] ss:$16 sps:$4 sm:$0xff]   ;;  %v4472_v0 = vld [vmem:[%s6276_s5 + $0x3c4] ss:$16 sps:$4 sm:$0xff]  }
 0x122   :  { %1261 = vmatprep.subr.bf16.mxu0 %v4352_v1  ;;  %1304 = vmatprep.subr.bf16.mxu1 %v4355_v2  ;;  %v4412_v1 = vld [vmem:[%s6276_s5 + $0x124] ss:$16 sps:$4 sm:$0xff]   ;;  %v4410_v2 = vld [vmem:[%s6276_s5 + $0x120] ss:$16 sps:$4 sm:$0xff]  }
 0x125   :  { %1262 = vmatpush2.bf16.msra.mxu0 %v4350_v3  ;;  %1305 = vmatpush2.bf16.msra.mxu1 %v4353_v4  ;;  %v4476_v3 = vld [vmem:[%s6276_s5 + $0x3a0] ss:$16 sps:$4 sm:$0xff]   ;;  %v4478_v4 = vld [vmem:[%s6276_s5 + $0x3a4] ss:$16 sps:$4 sm:$0xff]  }
 0x126   :  { %1263 = vmatprep.subr.bf16.mxu0 %v4358_v5  ;;  %1306 = vmatprep.subr.bf16.mxu1 %v4361_v6  ;;  %v4415_v5 = vld [vmem:[%s6276_s5 + $0x104] ss:$16 sps:$4 sm:$0xff]   ;;  %v4413_v6 = vld [vmem:[%s6276_s5 + $0x100] ss:$16 sps:$4 sm:$0xff]  }
 0x129   :  { %1264 = vmatpush2.bf16.msra.mxu0 %v4356_v7  ;;  %1307 = vmatpush2.bf16.msra.mxu1 %v4359_v8  ;;  %v4482_v7 = vld [vmem:[%s6276_s5 + $0x380] ss:$16 sps:$4 sm:$0xff]   ;;  %v4484_v8 = vld [vmem:[%s6276_s5 + $0x384] ss:$16 sps:$4 sm:$0xff]  }
 0x12a   :  { %1265 = vmatprep.subr.bf16.mxu0 %v4364_v9  ;;  %1308 = vmatprep.subr.bf16.mxu1 %v4367_v10  ;;  %v4421_v9 = vld [vmem:[%s6276_s5 + $0xec] ss:$16 sps:$4 sm:$0xff]   ;;  %v4488_v10 = vld [vmem:[%s6276_s5 + $0x360] ss:$16 sps:$4 sm:$0xff]  }
 0x12d   :  { %1266 = vmatpush2.bf16.msra.mxu0 %v4362_v13  ;;  %1309 = vmatpush2.bf16.msra.mxu1 %v4365_v14  ;;  %v4490_v13 = vld [vmem:[%s6276_s5 + $0x364] ss:$16 sps:$4 sm:$0xff]  }
 0x12e   :  { %2123 = vmatprep.subr.bf16.mxu0 %v4370_v15  ;;  %2166 = vmatprep.subr.bf16.mxu1 %v4418_v24  ;;  %v4496_v14 = vld [vmem:[%s6276_s5 + $0x344] ss:$16 sps:$4 sm:$0xff]   ;;  %v4494_v15 = vld [vmem:[%s6276_s5 + $0x340] ss:$16 sps:$4 sm:$0xff]  }
 0x130   :  { %1268 = vmatmul.mubr.bf16.vlgmr.msra.gmra.mxu0 %v5163_v11  ;;  %1311 = vmatmul.mubr.bf16.vlgmr.msra.gmra.mxu1 %v5165_v12  ;;  %v4379_v11 = vld [vmem:[%s6276_s5 + $0x84] ss:$16 sps:$4 sm:$0xff]   ;;  %v4377_v12 = vld [vmem:[%s6276_s5 + $0x80] ss:$16 sps:$4 sm:$0xff]  }
 0x131   :  { %2124 = vmatpush1.bf16.msra.mxu0 %v4368_v16  ;;  %2167 = vmatpush1.bf16.msra.mxu1 %v4416_v23  ;;  %v4502_v16 = vld [vmem:[%s6276_s5 + $0x324] ss:$16 sps:$4 sm:$0xff]  }
 0x132   :  { %2125 = vmatprep.subr.bf16.mxu0 %v4373_v17  ;;  %2168 = vmatprep.subr.bf16.mxu1 %v4424_v28  ;;  %v4500_v17 = vld [vmem:[%s6276_s5 + $0x320] ss:$16 sps:$4 sm:$0xff]  }
 0x135   :  { %2126 = vmatpush1.bf16.msra.mxu0 %v4371_v18  ;;  %2169 = vmatpush1.bf16.msra.mxu1 %v4422_v27  ;;  %v4508_v18 = vld [vmem:[%s6276_s5 + $0x304] ss:$16 sps:$4 sm:$0xff]  }
 0x136   :  { %2127 = vmatprep.subr.bf16.mxu0 %v4376_v19  ;;  %2170 = vmatprep.subr.bf16.mxu1 %v4430_v32  ;;  %v4506_v19 = vld [vmem:[%s6276_s5 + $0x300] ss:$16 sps:$4 sm:$0xff]  }
 0x139   :  { %2128 = vmatpush1.bf16.msra.mxu0 %v4374_v20  ;;  %2171 = vmatpush1.bf16.msra.mxu1 %v4428_v31  ;;  %v4514_v20 = vld [vmem:[%s6276_s5 + $0x2ec] ss:$16 sps:$4 sm:$0xff]  }
 0x13a   :  { %2129 = vmatprep.subr.bf16.mxu0 %v4379_v11  ;;  %2172 = vmatprep.subr.bf16.mxu1 %v4436_v36  ;;  %v5552_v11 = vld [vmem:[%s6278_s4] sm:$0xf] }
 0x13d   :  { %2130 = vmatpush1.bf16.msra.mxu0 %v4377_v12  ;;  %2173 = vmatpush1.bf16.msra.mxu1 %v4434_v35  ;;  %v496_v12 = vrot.slane %v5552_v11, %v5145_v39 }
 0x13e   :  { %2131 = vmatprep.subr.bf16.mxu0 %v4382_v21  ;;  %2174 = vmatprep.subr.bf16.mxu1 %v4442_v44  ;;  %v492_v21 = vrot.slane %v5552_v11, %v5149_v41 }
 0x141   :  { %2132 = vmatpush1.bf16.msra.mxu0 %v4380_v22  ;;  %2175 = vmatpush1.bf16.msra.mxu1 %v4440_v43 }
 0x142   :  { %2133 = vmatprep.subr.bf16.mxu0 %v4385_v25  ;;  %2176 = vmatprep.subr.bf16.mxu1 %v4448_v48 }
 0x145   :  { %2134 = vmatpush1.bf16.msra.mxu0 %v4383_v26  ;;  %2177 = vmatpush1.bf16.msra.mxu1 %v4446_v47  ;;  %v4419_v47 = vld [vmem:[%s6276_s5 + $0xe8] ss:$16 sps:$4 sm:$0xff]  }
 0x146   :  { %2135 = vmatprep.subr.bf16.mxu0 %v4388_v29  ;;  %2178 = vmatprep.subr.bf16.mxu1 %v4454_v52  ;;  %v4431_v52 = vld [vmem:[%s6276_s5 + $0xa8] ss:$16 sps:$4 sm:$0xff]  }
 0x149   :  { %2136 = vmatpush1.bf16.msra.mxu0 %v4386_v30  ;;  %2179 = vmatpush1.bf16.msra.mxu1 %v4452_v51  ;;  %v4433_v51 = vld [vmem:[%s6276_s5 + $0xac] ss:$16 sps:$4 sm:$0xff]  }
 0x14a   :  { %2137 = vmatprep.subr.bf16.mxu0 %v4391_v33  ;;  %2180 = vmatprep.subr.bf16.mxu1 %v4460_v56  ;;  %v4443_v56 = vld [vmem:[%s6276_s5 + $0x68] ss:$16 sps:$4 sm:$0xff]  }
 0x14d   :  { %2138 = vmatpush1.bf16.msra.mxu0 %v4389_v34  ;;  %2181 = vmatpush1.bf16.msra.mxu1 %v4458_v55  ;;  %v4445_v55 = vld [vmem:[%s6276_s5 + $0x6c] ss:$16 sps:$4 sm:$0xff]  }
 0x14e   :  { %2139 = vmatprep.subr.bf16.mxu0 %v4394_v37  ;;  %2182 = vmatprep.subr.bf16.mxu1 %v4466_v60  ;;  %v4455_v60 = vld [vmem:[%s6276_s5 + $0x28] ss:$16 sps:$4 sm:$0xff]  }
 0x151   :  { %2140 = vmatpush2.bf16.msra.mxu0 %v4392_v38  ;;  %2183 = vmatpush2.bf16.msra.mxu1 %v4464_v59  ;;  %v4457_v59 = vld [vmem:[%s6276_s5 + $0x2c] ss:$16 sps:$4 sm:$0xff]  }
 0x152   :  { %2141 = vmatprep.subr.bf16.mxu0 %v4397_v45  ;;  %2184 = vmatprep.subr.bf16.mxu1 %v4472_v0  ;;  %v4467_v0 = vld [vmem:[%s6276_s5 + $0x1e8] ss:$16 sps:$4 sm:$0xff]  }
 0x155   :  { %2142 = vmatpush2.bf16.msra.mxu0 %v4395_v46  ;;  %2185 = vmatpush2.bf16.msra.mxu1 %v4470_v63  ;;  %v4469_v63 = vld [vmem:[%s6276_s5 + $0x1ec] ss:$16 sps:$4 sm:$0xff]  }
 0x156   :  { %2143 = vmatprep.subr.bf16.mxu0 %v4400_v49  ;;  %2186 = vmatprep.subr.bf16.mxu1 %v4478_v4  ;;  %v4427_v49 = vld [vmem:[%s6276_s5 + $0xcc] ss:$16 sps:$4 sm:$0xff]   ;;  %v4479_v4 = vld [vmem:[%s6276_s5 + $0x1a8] ss:$16 sps:$4 sm:$0xff]  }
 0x159   :  { %2144 = vmatpush2.bf16.msra.mxu0 %v4398_v50  ;;  %2187 = vmatpush2.bf16.msra.mxu1 %v4476_v3  ;;  %v4425_v50 = vld [vmem:[%s6276_s5 + $0xc8] ss:$16 sps:$4 sm:$0xff]   ;;  %v4481_v3 = vld [vmem:[%s6276_s5 + $0x1ac] ss:$16 sps:$4 sm:$0xff]  }
 0x15a   :  { %2145 = vmatprep.subr.bf16.mxu0 %v4403_v53  ;;  %2188 = vmatprep.subr.bf16.mxu1 %v4484_v8  ;;  %v4439_v53 = vld [vmem:[%s6276_s5 + $0x8c] ss:$16 sps:$4 sm:$0xff]   ;;  %v4491_v8 = vld [vmem:[%s6276_s5 + $0x168] ss:$16 sps:$4 sm:$0xff]  }
 0x15d   :  { %2146 = vmatpush2.bf16.msra.mxu0 %v4401_v54  ;;  %2189 = vmatpush2.bf16.msra.mxu1 %v4482_v7  ;;  %v4437_v54 = vld [vmem:[%s6276_s5 + $0x88] ss:$16 sps:$4 sm:$0xff]   ;;  %v4493_v7 = vld [vmem:[%s6276_s5 + $0x16c] ss:$16 sps:$4 sm:$0xff]  }
 0x15e   :  { %2147 = vmatprep.subr.bf16.mxu0 %v4406_v57  ;;  %2190 = vmatprep.subr.bf16.mxu1 %v4490_v13  ;;  %v4451_v57 = vld [vmem:[%s6276_s5 + $0x4c] ss:$16 sps:$4 sm:$0xff]   ;;  %v500_v13 = vrot.slane %v5552_v11, %v5151_v42 }
 0x161   :  { %2148 = vmatpush2.bf16.msra.mxu0 %v4404_v58  ;;  %2191 = vmatpush2.bf16.msra.mxu1 %v4488_v10  ;;  %v4449_v58 = vld [vmem:[%s6276_s5 + $0x48] ss:$16 sps:$4 sm:$0xff]   ;;  %v504_v10 = vrot.slane %v5552_v11, %v5147_v40 }
 0x162   :  { %2149 = vmatprep.subr.bf16.mxu0 %v4409_v61  ;;  %2192 = vmatprep.subr.bf16.mxu1 %v4496_v14  ;;  %v4463_v61 = vld [vmem:[%s6276_s5 + $0xc] ss:$16 sps:$4 sm:$0xff]   ;;  %v4503_v11 = vld [vmem:[%s6276_s5 + $0x128] ss:$16 sps:$4 sm:$0xff]  }
 0x165   :  { %2150 = vmatpush2.bf16.msra.mxu0 %v4407_v62  ;;  %2193 = vmatpush2.bf16.msra.mxu1 %v4494_v15  ;;  %v4461_v62 = vld [vmem:[%s6276_s5 + $0x8] ss:$16 sps:$4 sm:$0xff]  }
 0x166   :  { %2151 = vmatprep.subr.bf16.mxu0 %v4412_v1  ;;  %2194 = vmatprep.subr.bf16.mxu1 %v4502_v16  ;;  %v4475_v1 = vld [vmem:[%s6276_s5 + $0x1cc] ss:$16 sps:$4 sm:$0xff]   ;;  %v4497_v16 = vld [vmem:[%s6276_s5 + $0x148] ss:$16 sps:$4 sm:$0xff]  }
 0x169   :  { %2152 = vmatpush2.bf16.msra.mxu0 %v4410_v2  ;;  %2195 = vmatpush2.bf16.msra.mxu1 %v4500_v17  ;;  %v4473_v2 = vld [vmem:[%s6276_s5 + $0x1c8] ss:$16 sps:$4 sm:$0xff]  }
 0x16a   :  { %2153 = vmatprep.subr.bf16.mxu0 %v4415_v5  ;;  %2196 = vmatprep.subr.bf16.mxu1 %v4508_v18  ;;  %v4487_v5 = vld [vmem:[%s6276_s5 + $0x18c] ss:$16 sps:$4 sm:$0xff]  }
 0x16d   :  { %2154 = vmatpush2.bf16.msra.mxu0 %v4413_v6  ;;  %2197 = vmatpush2.bf16.msra.mxu1 %v4506_v19  ;;  %v4485_v6 = vld [vmem:[%s6276_s5 + $0x188] ss:$16 sps:$4 sm:$0xff]   ;;  %v4505_v19 = vld [vmem:[%s6276_s5 + $0x12c] ss:$16 sps:$4 sm:$0xff]  }
 0x16e   :  { %2209 = vmatprep.subr.bf16.mxu0 %v4421_v9  ;;  %2252 = vmatprep.subr.bf16.mxu1 %v4514_v20  ;;  %v4499_v9 = vld [vmem:[%s6276_s5 + $0x14c] ss:$16 sps:$4 sm:$0xff]  }
 0x1b0   :  { %v1183_v22 = vpop.f32.mrf.mxu0  ;;  %v1226_v23 = vpop.f32.mrf.mxu1 }
 0x1b1   :  { %v1184_v27 = vadd.f32 %v1183_v22, %v492_v21 }
 0x1b2   :  { %v1185_v24 = vpop.f32.mrf.mxu0  ;;  %v1228_v25 = vpop.f32.mrf.mxu1 }
 0x1b3   :  { %v1186_v26 = vadd.f32 %v1185_v24, %v496_v12  ;;  %v1227_v35 = vadd.f32 %v1226_v23, %v1184_v27 }
 0x1b4   :  { %v1187_v28 = vpop.f32.mrf.mxu0  ;;  %v1230_v29 = vpop.f32.mrf.mxu1 }
 0x1b5   :  { %v1188_v30 = vadd.f32 %v1187_v28, %v492_v21  ;;  %v1229_v32 = vadd.f32 %v1228_v25, %v1186_v26  ;;  %v1321_v45 = vmax.f32 %v1227_v35, 0.0  ;;  %v4511_v25 = vld [vmem:[%s6276_s5 + $0x10c] ss:$16 sps:$4 sm:$0xff]  }
 0x1b6   :  { %v1189_v31 = vpop.f32.mrf.mxu0  ;;  %v1232_v36 = vpop.f32.mrf.mxu1 }
 0x1b7   :  { %v1231_v33 = vadd.f32 %v1230_v29, %v1188_v30  ;;  %v1190_v34 = vadd.f32 %v1189_v31, %v496_v12  ;;  %v1322_v43 = vmax.f32 %v1229_v32, 0.0  ;;  %v4509_v32 = vld [vmem:[%s6276_s5 + $0x108] ss:$16 sps:$4 sm:$0xff]  }
 0x1b9   :  { %v1233_v37 = vadd.f32 %v1232_v36, %v1190_v34  ;;  %v1325_v38 = vmax.f32 %v1231_v33, 0.0 }
 0x1bb   :  { %v1326_v44 = vmax.f32 %v1233_v37, 0.0  ;;  %v5561_v48 = vpack.c.bf16 %v1325_v38, %v1321_v45  ;;  %v4512_v38 = vld [vmem:[%s6276_s5 + $0x2e8] ss:$16 sps:$4 sm:$0xff]  }
 0x1bc   :  { %v4515_v45 = vld [vmem:[%s6276_s5 + $0x2c8] ss:$16 sps:$4 sm:$0xff]  }
 0x1bd   :  { %v1330_v46 = vpack.c.bf16 %v1326_v44, %v1322_v43  ;;  %v4517_v44 = vld [vmem:[%s6276_s5 + $0x2cc] ss:$16 sps:$4 sm:$0xff]  }
 0x1bf   :  { %2155 = vmatprep.mubr.bf16.mxu0 %v1330_v46 }
 0x1c0   :  { %2156 = vmatmul.mubr.bf16.vlgmr.msra.gmra.mxu0 %v5561_v48 }
 0x1c1   :  { %2210 = vmatpush1.bf16.msra.mxu0 %v4419_v47  ;;  %2241 = vmatprep.mubr.bf16.mxu0 %v1330_v46  ;;  %v4520_v46 = vld [vmem:[%s6276_s5 + $0x2ac] ss:$16 sps:$4 sm:$0xff]   ;;  %v4518_v47 = vld [vmem:[%s6276_s5 + $0x2a8] ss:$16 sps:$4 sm:$0xff]  }
 0x1c2   :  { %2211 = vmatprep.subr.bf16.mxu0 %v4427_v49  ;;  %v4521_v49 = vld [vmem:[%s6276_s5 + $0x288] ss:$16 sps:$4 sm:$0xff]  }
 0x1c5   :  { %2212 = vmatpush1.bf16.msra.mxu0 %v4425_v50  ;;  %v4560_v50 = vld [vmem:[%s6279_s7 + $0xe0] ss:$16 sps:$4 sm:$0xff]  }
 0x1c6   :  { %2213 = vmatprep.subr.bf16.mxu0 %v4433_v51  ;;  %v4562_v51 = vld [vmem:[%s6279_s7 + $0xe4] ss:$16 sps:$4 sm:$0xff]  }
 0x1c9   :  { %2214 = vmatpush1.bf16.msra.mxu0 %v4431_v52  ;;  %v4526_v52 = vld [vmem:[%s6276_s5 + $0x26c] ss:$16 sps:$4 sm:$0xff]  }
 0x1ca   :  { %2215 = vmatprep.subr.bf16.mxu0 %v4439_v53  ;;  %v4565_v53 = vld [vmem:[%s6279_s7 + $0xc4] ss:$16 sps:$4 sm:$0xff]  }
 0x1cd   :  { %2216 = vmatpush1.bf16.msra.mxu0 %v4437_v54  ;;  %v4524_v54 = vld [vmem:[%s6276_s5 + $0x268] ss:$16 sps:$4 sm:$0xff]  }
 0x1ce   :  { %2217 = vmatprep.subr.bf16.mxu0 %v4445_v55  ;;  %v4563_v55 = vld [vmem:[%s6279_s7 + $0xc0] ss:$16 sps:$4 sm:$0xff]  }
 0x1d1   :  { %2218 = vmatpush1.bf16.msra.mxu0 %v4443_v56  ;;  %v4568_v56 = vld [vmem:[%s6279_s7 + $0xa4] ss:$16 sps:$4 sm:$0xff]  }
 0x1d2   :  { %2219 = vmatprep.subr.bf16.mxu0 %v4451_v57  ;;  %v4529_v57 = vld [vmem:[%s6276_s5 + $0x24c] ss:$16 sps:$4 sm:$0xff]  }
 0x1d5   :  { %2220 = vmatpush1.bf16.msra.mxu0 %v4449_v58  ;;  %v4527_v58 = vld [vmem:[%s6276_s5 + $0x248] ss:$16 sps:$4 sm:$0xff]  }
 0x1d6   :  { %2221 = vmatprep.subr.bf16.mxu0 %v4457_v59  ;;  %v4566_v59 = vld [vmem:[%s6279_s7 + $0xa0] ss:$16 sps:$4 sm:$0xff]  }
 0x1d9   :  { %2222 = vmatpush1.bf16.msra.mxu0 %v4455_v60  ;;  %v4571_v60 = vld [vmem:[%s6279_s7 + $0x84] ss:$16 sps:$4 sm:$0xff]  }
 0x1da   :  { %2223 = vmatprep.subr.bf16.mxu0 %v4463_v61  ;;  %v4532_v61 = vld [vmem:[%s6276_s5 + $0x22c] ss:$16 sps:$4 sm:$0xff]  }
 0x1dd   :  { %2224 = vmatpush1.bf16.msra.mxu0 %v4461_v62  ;;  %v4530_v62 = vld [vmem:[%s6276_s5 + $0x228] ss:$16 sps:$4 sm:$0xff]  }
 0x1de   :  { %2225 = vmatprep.subr.bf16.mxu0 %v4469_v63  ;;  %v4569_v63 = vld [vmem:[%s6279_s7 + $0x80] ss:$16 sps:$4 sm:$0xff]  }
 0x1e1   :  { %2226 = vmatpush2.bf16.msra.mxu0 %v4467_v0  ;;  %v4574_v0 = vld [vmem:[%s6279_s7 + $0x64] ss:$16 sps:$4 sm:$0xff]  }
 0x1e2   :  { %2227 = vmatprep.subr.bf16.mxu0 %v4475_v1  ;;  %v4535_v1 = vld [vmem:[%s6276_s5 + $0x20c] ss:$16 sps:$4 sm:$0xff]  }
 0x1e5   :  { %2228 = vmatpush2.bf16.msra.mxu0 %v4473_v2  ;;  %v4533_v2 = vld [vmem:[%s6276_s5 + $0x208] ss:$16 sps:$4 sm:$0xff]  }
 0x1e6   :  { %2229 = vmatprep.subr.bf16.mxu0 %v4481_v3  ;;  %v4538_v3 = vld [vmem:[%s6276_s5 + $0x3ec] ss:$16 sps:$4 sm:$0xff]  }
 0x1e9   :  { %2230 = vmatpush2.bf16.msra.mxu0 %v4479_v4  ;;  %v4572_v4 = vld [vmem:[%s6279_s7 + $0x60] ss:$16 sps:$4 sm:$0xff]  }
 0x1ea   :  { %2231 = vmatprep.subr.bf16.mxu0 %v4487_v5  ;;  %v4577_v5 = vld [vmem:[%s6279_s7 + $0x44] ss:$16 sps:$4 sm:$0xff]  }
 0x1ed   :  { %2232 = vmatpush2.bf16.msra.mxu0 %v4485_v6  ;;  %v4575_v6 = vld [vmem:[%s6279_s7 + $0x40] ss:$16 sps:$4 sm:$0xff]  }
 0x1ee   :  { %2233 = vmatprep.subr.bf16.mxu0 %v4493_v7  ;;  %v4536_v7 = vld [vmem:[%s6276_s5 + $0x3e8] ss:$16 sps:$4 sm:$0xff]  }
 0x1f0   :  { %v1269_v14 = vpop.f32.mrf.mxu0  ;;  %v1312_v15 = vpop.f32.mrf.mxu1 }
 0x1f1   :  { %2234 = vmatpush2.bf16.msra.mxu0 %v4491_v8  ;;  %v1270_v12 = vadd.f32 %v1269_v14, %v500_v13  ;;  %v4580_v8 = vld [vmem:[%s6279_s7 + $0x24] ss:$16 sps:$4 sm:$0xff]  }
 0x1f2   :  { %v1271_v17 = vpop.f32.mrf.mxu0  ;;  %v1314_v18 = vpop.f32.mrf.mxu1  ;;  %2235 = vmatprep.subr.bf16.mxu0 %v4499_v9  ;;  %v4541_v9 = vld [vmem:[%s6276_s5 + $0x3cc] ss:$16 sps:$4 sm:$0xff]   ;;  %v4583_v14 = vld [vmem:[%s6279_s7 + $0x4] ss:$16 sps:$4 sm:$0xff]  }
 0x1f3   :  { %v1272_v20 = vadd.f32 %v1271_v17, %v504_v10  ;;  %v1313_v29 = vadd.f32 %v1312_v15, %v1270_v12  ;;  %v4544_v15 = vld [vmem:[%s6276_s5 + $0x3ac] ss:$16 sps:$4 sm:$0xff]   ;;  %v4542_v17 = vld [vmem:[%s6276_s5 + $0x3a8] ss:$16 sps:$4 sm:$0xff]  }
 0x1f4   :  { %v1273_v21 = vpop.f32.mrf.mxu0  ;;  %v1316_v22 = vpop.f32.mrf.mxu1  ;;  %v4545_v12 = vld [vmem:[%s6276_s5 + $0x388] ss:$16 sps:$4 sm:$0xff]  }
 0x1f5   :  { %v1274_v23 = vadd.f32 %v1273_v21, %v500_v13  ;;  %2236 = vmatpush2.bf16.msra.mxu0 %v4497_v16  ;;  %v1315_v26 = vadd.f32 %v1314_v18, %v1272_v20  ;;  %v1323_v36 = vmax.f32 %v1313_v29, 0.0  ;;  %v4539_v13 = vld [vmem:[%s6276_s5 + $0x3c8] ss:$16 sps:$4 sm:$0xff]   ;;  %v4581_v16 = vld [vmem:[%s6279_s7] ss:$16 sps:$4 sm:$0xff]  }
 0x1f6   :  { %v1275_v24 = vpop.f32.mrf.mxu0  ;;  %2237 = vmatprep.subr.bf16.mxu0 %v4505_v19  ;;  %v1318_v30 = vpop.f32.mrf.mxu1  ;;  %v4586_v18 = vld [vmem:[%s6279_s7 + $0x1e4] ss:$16 sps:$4 sm:$0xff]   ;;  %v4547_v19 = vld [vmem:[%s6276_s5 + $0x38c] ss:$16 sps:$4 sm:$0xff]   ;;  %v4584_v20 = vld [vmem:[%s6279_s7 + $0x1e0] ss:$16 sps:$4 sm:$0xff]  }
 0x1f7   :  { %v1317_v27 = vadd.f32 %v1316_v22, %v1274_v23  ;;  %v1276_v28 = vadd.f32 %v1275_v24, %v504_v10  ;;  %v1324_v34 = vmax.f32 %v1315_v26, 0.0  ;;  %v4578_v10 = vld [vmem:[%s6279_s7 + $0x20] ss:$16 sps:$4 sm:$0xff]   ;;  %v4589_v21 = vld [vmem:[%s6279_s7 + $0x1c4] ss:$16 sps:$4 sm:$0xff]  }
 0x1f8   :  { %v4550_v22 = vld [vmem:[%s6276_s5 + $0x36c] ss:$16 sps:$4 sm:$0xff]   ;;  %v4587_v23 = vld [vmem:[%s6279_s7 + $0x1c0] ss:$16 sps:$4 sm:$0xff]   ;;  %v4592_v24 = vld [vmem:[%s6279_s7 + $0x1a4] ss:$16 sps:$4 sm:$0xff]  }
 0x1f9   :  { %v1319_v31 = vadd.f32 %v1318_v30, %v1276_v28  ;;  %2238 = vmatpush2.bf16.msra.mxu0 %v4503_v11  ;;  %v1327_v33 = vmax.f32 %v1317_v27, 0.0  ;;  %v4548_v11 = vld [vmem:[%s6276_s5 + $0x368] ss:$16 sps:$4 sm:$0xff]   ;;  %v4590_v26 = vld [vmem:[%s6279_s7 + $0x1a0] ss:$16 sps:$4 sm:$0xff]  }
 0x1fa   :  { %2239 = vmatprep.subr.bf16.mxu0 %v4511_v25  ;;  %v4553_v25 = vld [vmem:[%s6276_s5 + $0x34c] ss:$16 sps:$4 sm:$0xff]   ;;  %v4551_v27 = vld [vmem:[%s6276_s5 + $0x348] ss:$16 sps:$4 sm:$0xff]   ;;  %v4595_v28 = vld [vmem:[%s6279_s7 + $0x184] ss:$16 sps:$4 sm:$0xff]  }
 0x1fb   :  { %v1328_v35 = vmax.f32 %v1319_v31, 0.0  ;;  %v5661_v43 = vpack.c.bf16 %v1327_v33, %v1323_v36  ;;  %v4556_v29 = vld [vmem:[%s6276_s5 + $0x32c] ss:$16 sps:$4 sm:$0xff]   ;;  %v4593_v30 = vld [vmem:[%s6279_s7 + $0x180] ss:$16 sps:$4 sm:$0xff]  }
 0x1fc   :  { %v4554_v31 = vld [vmem:[%s6276_s5 + $0x328] ss:$16 sps:$4 sm:$0xff]   ;;  %v4559_v33 = vld [vmem:[%s6276_s5 + $0x30c] ss:$16 sps:$4 sm:$0xff]   ;;  %v4601_v36 = vld [vmem:[%s6279_s7 + $0x144] ss:$16 sps:$4 sm:$0xff]  }
 0x1fd   :  { %v1332_v37 = vpack.c.bf16 %v1328_v35, %v1324_v34  ;;  %2240 = vmatpush2.bf16.msra.mxu0 %v4509_v32  ;;  %v4598_v32 = vld [vmem:[%s6279_s7 + $0x164] ss:$16 sps:$4 sm:$0xff]   ;;  %v4596_v34 = vld [vmem:[%s6279_s7 + $0x160] ss:$16 sps:$4 sm:$0xff]   ;;  %v4557_v35 = vld [vmem:[%s6276_s5 + $0x308] ss:$16 sps:$4 sm:$0xff]  }
 0x1fe   :  { %3097 = vmatprep.subr.bf16.mxu0 %v4562_v51  ;;  %v4620_v51 = vld [vmem:[%s6279_s7 + $0x2a0] ss:$16 sps:$4 sm:$0xff]  }
 0x1ff   :  { %2198 = vmatprep.mubr.bf16.mxu1 %v1332_v37 }
 0x200   :  { %2199 = vmatmul.mubr.bf16.vlgmr.msra.gmra.mxu1 %v5661_v43  ;;  %2242 = vmatmul.mubr.bf16.vlgmr.msra.gmra.mxu0 %v5561_v48  ;;  %v4523_v48 = vld [vmem:[%s6276_s5 + $0x28c] ss:$16 sps:$4 sm:$0xff]  }
 0x201   :  { %2253 = vmatpush1.bf16.msra.mxu1 %v4512_v38  ;;  %2284 = vmatprep.mubr.bf16.mxu1 %v1332_v37  ;;  %v4599_v37 = vld [vmem:[%s6279_s7 + $0x140] ss:$16 sps:$4 sm:$0xff]   ;;  %v4604_v38 = vld [vmem:[%s6279_s7 + $0x124] ss:$16 sps:$4 sm:$0xff]  }
 0x202   :  { %2254 = vmatprep.subr.bf16.mxu1 %v4517_v44  ;;  %3098 = vmatpush1.bf16.msra.mxu0 %v4560_v50  ;;  %v4602_v44 = vld [vmem:[%s6279_s7 + $0x120] ss:$16 sps:$4 sm:$0xff]   ;;  %v4616_v50 = vld [vmem:[%s6279_s7 + $0x2c4] ss:$16 sps:$4 sm:$0xff]  }
 0x203   :  { %3099 = vmatprep.subr.bf16.mxu0 %v4565_v53  ;;  %v4626_v53 = vld [vmem:[%s6279_s7 + $0x280] ss:$16 sps:$4 sm:$0xff]  }
 0x205   :  { %2255 = vmatpush1.bf16.msra.mxu1 %v4515_v45  ;;  %v4605_v45 = vld [vmem:[%s6279_s7 + $0x100] ss:$16 sps:$4 sm:$0xff]  }
 0x206   :  { %2256 = vmatprep.subr.bf16.mxu1 %v4520_v46  ;;  %3100 = vmatpush1.bf16.msra.mxu0 %v4563_v55  ;;  %v4608_v46 = vld [vmem:[%s6279_s7 + $0x2e0] ss:$16 sps:$4 sm:$0xff]  }
 0x207   :  { %3101 = vmatprep.subr.bf16.mxu0 %v4568_v56  ;;  %v4632_v55 = vld [vmem:[%s6279_s7 + $0x260] ss:$16 sps:$4 sm:$0xff]   ;;  %v4634_v56 = vld [vmem:[%s6279_s7 + $0x264] ss:$16 sps:$4 sm:$0xff]  }
 0x209   :  { %2257 = vmatpush1.bf16.msra.mxu1 %v4518_v47  ;;  %v4610_v47 = vld [vmem:[%s6279_s7 + $0x2e4] ss:$16 sps:$4 sm:$0xff]  }
 0x20a   :  { %2258 = vmatprep.subr.bf16.mxu1 %v4523_v48  ;;  %3102 = vmatpush1.bf16.msra.mxu0 %v4566_v59  ;;  %v4613_v48 = vld [vmem:[%s6279_s7 + $0xec] ss:$16 sps:$4 sm:$0xff]   ;;  %v4644_v59 = vld [vmem:[%s6279_s7 + $0x220] ss:$16 sps:$4 sm:$0xff]  }
 0x20b   :  { %3103 = vmatprep.subr.bf16.mxu0 %v4571_v60  ;;  %v4646_v60 = vld [vmem:[%s6279_s7 + $0x224] ss:$16 sps:$4 sm:$0xff]  }
 0x20d   :  { %2259 = vmatpush1.bf16.msra.mxu1 %v4521_v49  ;;  %v4614_v49 = vld [vmem:[%s6279_s7 + $0x2c0] ss:$16 sps:$4 sm:$0xff]  }
 0x20e   :  { %2260 = vmatprep.subr.bf16.mxu1 %v4526_v52  ;;  %3104 = vmatpush1.bf16.msra.mxu0 %v4569_v63  ;;  %v4622_v52 = vld [vmem:[%s6279_s7 + $0x2a4] ss:$16 sps:$4 sm:$0xff]   ;;  %v4656_v63 = vld [vmem:[%s6279_s7 + $0x3e0] ss:$16 sps:$4 sm:$0xff]  }
 0x20f   :  { %3105 = vmatprep.subr.bf16.mxu0 %v4574_v0  ;;  %v4658_v0 = vld [vmem:[%s6279_s7 + $0x3e4] ss:$16 sps:$4 sm:$0xff]  }
 0x211   :  { %2261 = vmatpush1.bf16.msra.mxu1 %v4524_v54  ;;  %v4628_v54 = vld [vmem:[%s6279_s7 + $0x284] ss:$16 sps:$4 sm:$0xff]  }
 0x212   :  { %2262 = vmatprep.subr.bf16.mxu1 %v4529_v57  ;;  %3106 = vmatpush1.bf16.msra.mxu0 %v4572_v4  ;;  %v4638_v57 = vld [vmem:[%s6279_s7 + $0x240] ss:$16 sps:$4 sm:$0xff]   ;;  %v4670_v4 = vld [vmem:[%s6279_s7 + $0x3a4] ss:$16 sps:$4 sm:$0xff]  }
 0x213   :  { %3107 = vmatprep.subr.bf16.mxu0 %v4577_v5  ;;  %v4674_v5 = vld [vmem:[%s6279_s7 + $0x380] ss:$16 sps:$4 sm:$0xff]  }
 0x215   :  { %2263 = vmatpush1.bf16.msra.mxu1 %v4527_v58  ;;  %v4640_v58 = vld [vmem:[%s6279_s7 + $0x244] ss:$16 sps:$4 sm:$0xff]  }
 0x216   :  { %2264 = vmatprep.subr.bf16.mxu1 %v4532_v61  ;;  %3108 = vmatpush1.bf16.msra.mxu0 %v4575_v6  ;;  %v4650_v61 = vld [vmem:[%s6279_s7 + $0x200] ss:$16 sps:$4 sm:$0xff]   ;;  %v4676_v6 = vld [vmem:[%s6279_s7 + $0x384] ss:$16 sps:$4 sm:$0xff]  }
 0x217   :  { %3109 = vmatprep.subr.bf16.mxu0 %v4580_v8  ;;  %v4682_v8 = vld [vmem:[%s6279_s7 + $0x364] ss:$16 sps:$4 sm:$0xff]  }
 0x219   :  { %2265 = vmatpush1.bf16.msra.mxu1 %v4530_v62  ;;  %v4652_v62 = vld [vmem:[%s6279_s7 + $0x204] ss:$16 sps:$4 sm:$0xff]  }
 0x21a   :  { %2266 = vmatprep.subr.bf16.mxu1 %v4535_v1  ;;  %3110 = vmatpush1.bf16.msra.mxu0 %v4578_v10  ;;  %v4662_v1 = vld [vmem:[%s6279_s7 + $0x3c0] ss:$16 sps:$4 sm:$0xff]  }
 0x21b   :  { %3111 = vmatprep.subr.bf16.mxu0 %v4583_v14  ;;  %v4686_v10 = vld [vmem:[%s6279_s7 + $0x340] ss:$16 sps:$4 sm:$0xff]  }
 0x21c   :  { %v4692_v14 = vld [vmem:[%s6279_s7 + $0x320] ss:$16 sps:$4 sm:$0xff]  }
 0x21d   :  { %2267 = vmatpush1.bf16.msra.mxu1 %v4533_v2  ;;  %v4664_v2 = vld [vmem:[%s6279_s7 + $0x3c4] ss:$16 sps:$4 sm:$0xff]  }
 0x21e   :  { %2268 = vmatprep.subr.bf16.mxu1 %v4538_v3  ;;  %3112 = vmatpush1.bf16.msra.mxu0 %v4581_v16  ;;  %v4668_v3 = vld [vmem:[%s6279_s7 + $0x3a0] ss:$16 sps:$4 sm:$0xff]  }
 0x21f   :  { %3113 = vmatprep.subr.bf16.mxu0 %v4586_v18  ;;  %v4698_v16 = vld [vmem:[%s6279_s7 + $0x300] ss:$16 sps:$4 sm:$0xff]  }
 0x221   :  { %2269 = vmatpush2.bf16.msra.mxu1 %v4536_v7  ;;  %v4680_v7 = vld [vmem:[%s6279_s7 + $0x360] ss:$16 sps:$4 sm:$0xff]  }
 0x222   :  { %2270 = vmatprep.subr.bf16.mxu1 %v4541_v9  ;;  %3114 = vmatpush2.bf16.msra.mxu0 %v4584_v20  ;;  %v4688_v9 = vld [vmem:[%s6279_s7 + $0x344] ss:$16 sps:$4 sm:$0xff]   ;;  %v5957_v20 = vld [vmem:[%s6280_s6] sm:$0xf] }
 0x223   :  { %3115 = vmatprep.subr.bf16.mxu0 %v4589_v21  ;;  %v1470_v21 = vrot.slane %v5957_v20, %v5145_v39 }
 0x225   :  { %2271 = vmatpush2.bf16.msra.mxu1 %v4539_v13  ;;  %v4694_v13 = vld [vmem:[%s6279_s7 + $0x324] ss:$16 sps:$4 sm:$0xff]  }
 0x226   :  { %2272 = vmatprep.subr.bf16.mxu1 %v4544_v15  ;;  %3116 = vmatpush2.bf16.msra.mxu0 %v4587_v23  ;;  %v4700_v15 = vld [vmem:[%s6279_s7 + $0x304] ss:$16 sps:$4 sm:$0xff]  }
 0x227   :  { %3117 = vmatprep.subr.bf16.mxu0 %v4592_v24 }
 0x229   :  { %2273 = vmatpush2.bf16.msra.mxu1 %v4542_v17  ;;  %v4706_v17 = vld [vmem:[%s6279_s7 + $0x2ec] ss:$16 sps:$4 sm:$0xff]  }
 0x22a   :  { %2274 = vmatprep.subr.bf16.mxu1 %v4547_v19  ;;  %3118 = vmatpush2.bf16.msra.mxu0 %v4590_v26 }
 0x22b   :  { %3119 = vmatprep.subr.bf16.mxu0 %v4595_v28 }
 0x22d   :  { %2275 = vmatpush2.bf16.msra.mxu1 %v4545_v12 }
 0x22e   :  { %2276 = vmatprep.subr.bf16.mxu1 %v4550_v22  ;;  %3120 = vmatpush2.bf16.msra.mxu0 %v4593_v30  ;;  %v1466_v22 = vrot.slane %v5957_v20, %v5149_v41 }
 0x22f   :  { %3121 = vmatprep.subr.bf16.mxu0 %v4598_v32 }
 0x231   :  { %2277 = vmatpush2.bf16.msra.mxu1 %v4548_v11 }
 0x232   :  { %2278 = vmatprep.subr.bf16.mxu1 %v4553_v25  ;;  %3122 = vmatpush2.bf16.msra.mxu0 %v4596_v34 }
 0x233   :  { %3123 = vmatprep.subr.bf16.mxu0 %v4601_v36 }
 0x235   :  { %2279 = vmatpush2.bf16.msra.mxu1 %v4551_v27 }
 0x236   :  { %2280 = vmatprep.subr.bf16.mxu1 %v4556_v29  ;;  %3124 = vmatpush2.bf16.msra.mxu0 %v4599_v37 }
 0x237   :  { %3125 = vmatprep.subr.bf16.mxu0 %v4604_v38 }
 0x239   :  { %2281 = vmatpush2.bf16.msra.mxu1 %v4554_v31 }
 0x23a   :  { %2282 = vmatprep.subr.bf16.mxu1 %v4559_v33  ;;  %3126 = vmatpush2.bf16.msra.mxu0 %v4602_v44 }
 0x23d   :  { %2283 = vmatpush2.bf16.msra.mxu1 %v4557_v35 }
 0x23e   :  { %3140 = vmatprep.subr.bf16.mxu1 %v4610_v47  ;;  %v4617_v47 = vld [vmem:[%s6279_s7 + $0xc8] ss:$16 sps:$4 sm:$0xff]  }
 0x240   :  { %2285 = vmatmul.mubr.bf16.vlgmr.msra.gmra.mxu1 %v5661_v43  ;;  %v4607_v43 = vld [vmem:[%s6279_s7 + $0x104] ss:$16 sps:$4 sm:$0xff]  }
 0x241   :  { %3127 = vmatprep.subr.bf16.mxu0 %v4607_v43  ;;  %3141 = vmatpush1.bf16.msra.mxu1 %v4608_v46  ;;  %v4611_v43 = vld [vmem:[%s6279_s7 + $0xe8] ss:$16 sps:$4 sm:$0xff]   ;;  %v4619_v46 = vld [vmem:[%s6279_s7 + $0xcc] ss:$16 sps:$4 sm:$0xff]  }
 0x242   :  { %3128 = vmatpush2.bf16.msra.mxu0 %v4605_v45  ;;  %3142 = vmatprep.subr.bf16.mxu1 %v4616_v50  ;;  %v4631_v50 = vld [vmem:[%s6279_s7 + $0x8c] ss:$16 sps:$4 sm:$0xff]  }
 0x243   :  { %3183 = vmatprep.subr.bf16.mxu0 %v4613_v48  ;;  %v4625_v48 = vld [vmem:[%s6279_s7 + $0xac] ss:$16 sps:$4 sm:$0xff]  }
 0x245   :  { %3143 = vmatpush1.bf16.msra.mxu1 %v4614_v49  ;;  %v4623_v49 = vld [vmem:[%s6279_s7 + $0xa8] ss:$16 sps:$4 sm:$0xff]  }
 0x246   :  { %3144 = vmatprep.subr.bf16.mxu1 %v4622_v52  ;;  %v4637_v52 = vld [vmem:[%s6279_s7 + $0x6c] ss:$16 sps:$4 sm:$0xff]  }
 0x249   :  { %3145 = vmatpush1.bf16.msra.mxu1 %v4620_v51  ;;  %v4629_v51 = vld [vmem:[%s6279_s7 + $0x88] ss:$16 sps:$4 sm:$0xff]  }
 0x24a   :  { %3146 = vmatprep.subr.bf16.mxu1 %v4628_v54  ;;  %v4643_v54 = vld [vmem:[%s6279_s7 + $0x4c] ss:$16 sps:$4 sm:$0xff]  }
 0x24d   :  { %3147 = vmatpush1.bf16.msra.mxu1 %v4626_v53  ;;  %v4635_v53 = vld [vmem:[%s6279_s7 + $0x68] ss:$16 sps:$4 sm:$0xff]  }
 0x24e   :  { %3148 = vmatprep.subr.bf16.mxu1 %v4634_v56  ;;  %v4649_v56 = vld [vmem:[%s6279_s7 + $0x2c] ss:$16 sps:$4 sm:$0xff]  }
 0x251   :  { %3149 = vmatpush1.bf16.msra.mxu1 %v4632_v55  ;;  %v4641_v55 = vld [vmem:[%s6279_s7 + $0x48] ss:$16 sps:$4 sm:$0xff]  }
 0x252   :  { %3150 = vmatprep.subr.bf16.mxu1 %v4640_v58  ;;  %v4655_v58 = vld [vmem:[%s6279_s7 + $0xc] ss:$16 sps:$4 sm:$0xff]  }
 0x255   :  { %3151 = vmatpush1.bf16.msra.mxu1 %v4638_v57  ;;  %v4647_v57 = vld [vmem:[%s6279_s7 + $0x28] ss:$16 sps:$4 sm:$0xff]  }
 0x256   :  { %3152 = vmatprep.subr.bf16.mxu1 %v4646_v60  ;;  %v4661_v60 = vld [vmem:[%s6279_s7 + $0x1ec] ss:$16 sps:$4 sm:$0xff]  }
 0x259   :  { %3153 = vmatpush1.bf16.msra.mxu1 %v4644_v59  ;;  %v4653_v59 = vld [vmem:[%s6279_s7 + $0x8] ss:$16 sps:$4 sm:$0xff]  }
 0x25a   :  { %3154 = vmatprep.subr.bf16.mxu1 %v4652_v62  ;;  %v4667_v62 = vld [vmem:[%s6279_s7 + $0x1cc] ss:$16 sps:$4 sm:$0xff]  }
 0x25d   :  { %3155 = vmatpush1.bf16.msra.mxu1 %v4650_v61  ;;  %v4659_v61 = vld [vmem:[%s6279_s7 + $0x1e8] ss:$16 sps:$4 sm:$0xff]  }
 0x25e   :  { %3156 = vmatprep.subr.bf16.mxu1 %v4658_v0  ;;  %v4673_v0 = vld [vmem:[%s6279_s7 + $0x1ac] ss:$16 sps:$4 sm:$0xff]  }
 0x261   :  { %3157 = vmatpush2.bf16.msra.mxu1 %v4656_v63  ;;  %v4665_v63 = vld [vmem:[%s6279_s7 + $0x1c8] ss:$16 sps:$4 sm:$0xff]  }
 0x262   :  { %3158 = vmatprep.subr.bf16.mxu1 %v4664_v2  ;;  %v4679_v2 = vld [vmem:[%s6279_s7 + $0x18c] ss:$16 sps:$4 sm:$0xff]  }
 0x265   :  { %3159 = vmatpush2.bf16.msra.mxu1 %v4662_v1  ;;  %v4671_v1 = vld [vmem:[%s6279_s7 + $0x1a8] ss:$16 sps:$4 sm:$0xff]  }
 0x266   :  { %3160 = vmatprep.subr.bf16.mxu1 %v4670_v4  ;;  %v4677_v4 = vld [vmem:[%s6279_s7 + $0x188] ss:$16 sps:$4 sm:$0xff]  }
 0x269   :  { %3161 = vmatpush2.bf16.msra.mxu1 %v4668_v3 }
 0x26a   :  { %3162 = vmatprep.subr.bf16.mxu1 %v4676_v6 }
 0x26d   :  { %3163 = vmatpush2.bf16.msra.mxu1 %v4674_v5  ;;  %v4685_v5 = vld [vmem:[%s6279_s7 + $0x16c] ss:$16 sps:$4 sm:$0xff]  }
 0x26e   :  { %3164 = vmatprep.subr.bf16.mxu1 %v4682_v8  ;;  %v4691_v8 = vld [vmem:[%s6279_s7 + $0x14c] ss:$16 sps:$4 sm:$0xff]  }
 0x271   :  { %3165 = vmatpush2.bf16.msra.mxu1 %v4680_v7  ;;  %v4683_v7 = vld [vmem:[%s6279_s7 + $0x168] ss:$16 sps:$4 sm:$0xff]  }
 0x272   :  { %3166 = vmatprep.subr.bf16.mxu1 %v4688_v9 }
 0x275   :  { %3167 = vmatpush2.bf16.msra.mxu1 %v4686_v10  ;;  %v1478_v10 = vrot.slane %v5957_v20, %v5147_v40 }
 0x276   :  { %3168 = vmatprep.subr.bf16.mxu1 %v4694_v13  ;;  %v4689_v13 = vld [vmem:[%s6279_s7 + $0x148] ss:$16 sps:$4 sm:$0xff]  }
 0x279   :  { %3169 = vmatpush2.bf16.msra.mxu1 %v4692_v14  ;;  %v1474_v14 = vrot.slane %v5957_v20, %v5151_v42  ;;  %v4703_v20 = vld [vmem:[%s6279_s7 + $0x10c] ss:$16 sps:$4 sm:$0xff]  }
 0x27a   :  { %3170 = vmatprep.subr.bf16.mxu1 %v4700_v15 }
 0x27d   :  { %3171 = vmatpush2.bf16.msra.mxu1 %v4698_v16  ;;  %v4697_v16 = vld [vmem:[%s6279_s7 + $0x12c] ss:$16 sps:$4 sm:$0xff]  }
 0x27e   :  { %3226 = vmatprep.subr.bf16.mxu1 %v4706_v17 }
 0x280   :  { %v2157_v18 = vpop.f32.mrf.mxu0 }
 0x281   :  { %v2158_v27 = vadd.f32 %v2157_v18, %v1466_v22 }
 0x282   :  { %v2159_v19 = vpop.f32.mrf.mxu0 }
 0x283   :  { %v2160_v25 = vadd.f32 %v2159_v19, %v1470_v21 }
 0x284   :  { %v2161_v12 = vpop.f32.mrf.mxu0 }
 0x285   :  { %v2162_v26 = vadd.f32 %v2161_v12, %v1466_v22 }
 0x286   :  { %v2163_v11 = vpop.f32.mrf.mxu0 }
 0x287   :  { %v2164_v29 = vadd.f32 %v2163_v11, %v1470_v21  ;;  %v4695_v21 = vld [vmem:[%s6279_s7 + $0x128] ss:$16 sps:$4 sm:$0xff]  }
 0x2c0   :  { %v2200_v23 = vpop.f32.mrf.mxu1  ;;  %v2243_v3 = vpop.f32.mrf.mxu0 }
 0x2c1   :  { %v2201_v32 = vadd.f32 %v2200_v23, %v2158_v27  ;;  %v2244_v22 = vadd.f32 %v2243_v3, %v1474_v14  ;;  %v4733_v3 = vld [vmem:[%s6279_s7 + $0x3cc] ss:$16 sps:$4 sm:$0xff]  }
 0x2c2   :  { %v2202_v24 = vpop.f32.mrf.mxu1  ;;  %v2245_v6 = vpop.f32.mrf.mxu0 }
 0x2c3   :  { %v2203_v30 = vadd.f32 %v2202_v24, %v2160_v25  ;;  %v2295_v38 = vmax.f32 %v2201_v32, 0.0  ;;  %v2246_v19 = vadd.f32 %v2245_v6, %v1478_v10  ;;  %v4734_v6 = vld [vmem:[%s6279_s7 + $0x3a8] ss:$16 sps:$4 sm:$0xff]  }
 0x2c4   :  { %v2204_v28 = vpop.f32.mrf.mxu1  ;;  %v2247_v9 = vpop.f32.mrf.mxu0 }
 0x2c5   :  { %v2205_v31 = vadd.f32 %v2204_v28, %v2162_v26  ;;  %v2296_v36 = vmax.f32 %v2203_v30, 0.0  ;;  %v2248_v12 = vadd.f32 %v2247_v9, %v1474_v14  ;;  %v4742_v9 = vld [vmem:[%s6279_s7 + $0x36c] ss:$16 sps:$4 sm:$0xff]   ;;  %v4743_v14 = vld [vmem:[%s6279_s7 + $0x348] ss:$16 sps:$4 sm:$0xff]  }
 0x2c6   :  { %v2206_v33 = vpop.f32.mrf.mxu1  ;;  %v2249_v17 = vpop.f32.mrf.mxu0 }
 0x2c7   :  { %v2207_v34 = vadd.f32 %v2206_v33, %v2164_v29  ;;  %v2299_v35 = vmax.f32 %v2205_v31, 0.0  ;;  %v2250_v11 = vadd.f32 %v2249_v17, %v1478_v10  ;;  %v4701_v29 = vld [vmem:[%s6279_s7 + $0x108] ss:$16 sps:$4 sm:$0xff]   ;;  %v4751_v17 = vld [vmem:[%s6279_s7 + $0x30c] ss:$16 sps:$4 sm:$0xff]  }
 0x2c8   :  { %v4740_v10 = vld [vmem:[%s6279_s7 + $0x368] ss:$16 sps:$4 sm:$0xff]  }
 0x2c9   :  { %v2300_v37 = vmax.f32 %v2207_v34, 0.0  ;;  %v5966_v45 = vpack.c.bf16 %v2299_v35, %v2295_v38  ;;  %v4704_v35 = vld [vmem:[%s6279_s7 + $0x2e8] ss:$16 sps:$4 sm:$0xff]  }
 0x2ca   :  { %v4707_v38 = vld [vmem:[%s6279_s7 + $0x2c8] ss:$16 sps:$4 sm:$0xff]  }
 0x2cb   :  { %v2304_v44 = vpack.c.bf16 %v2300_v37, %v2296_v36  ;;  %v4709_v37 = vld [vmem:[%s6279_s7 + $0x2cc] ss:$16 sps:$4 sm:$0xff]  }
 0x2cd   :  { %3129 = vmatprep.mubr.bf16.mxu0 %v2304_v44 }
 0x2ce   :  { %3130 = vmatmul.mubr.bf16.vlgmr.msra.gmra.mxu0 %v5966_v45 }
 0x2cf   :  { %3184 = vmatpush1.bf16.msra.mxu0 %v4611_v43  ;;  %3215 = vmatprep.mubr.bf16.mxu0 %v2304_v44  ;;  %v4712_v44 = vld [vmem:[%s6279_s7 + $0x2ac] ss:$16 sps:$4 sm:$0xff]   ;;  %v4710_v43 = vld [vmem:[%s6279_s7 + $0x2a8] ss:$16 sps:$4 sm:$0xff]  }
 0x2d0   :  { %3185 = vmatprep.subr.bf16.mxu0 %v4619_v46  ;;  %v4713_v46 = vld [vmem:[%s6279_s7 + $0x288] ss:$16 sps:$4 sm:$0xff]  }
 0x2d3   :  { %3186 = vmatpush1.bf16.msra.mxu0 %v4617_v47  ;;  %v4718_v47 = vld [vmem:[%s6279_s7 + $0x26c] ss:$16 sps:$4 sm:$0xff]  }
 0x2d4   :  { %3187 = vmatprep.subr.bf16.mxu0 %v4625_v48  ;;  %v4752_v48 = vld [vmem:[%s6281_s9 + $0x78] sm:$0xff]  }
 0x2d7   :  { %3188 = vmatpush1.bf16.msra.mxu0 %v4623_v49  ;;  %v4753_v49 = vld [vmem:[%s6281_s9 + $0x38] sm:$0xff]  }
 0x2d8   :  { %3189 = vmatprep.subr.bf16.mxu0 %v4631_v50  ;;  %v4754_v50 = vld [vmem:[%s6281_s9 + $0x70] sm:$0xff]  }
 0x2db   :  { %3190 = vmatpush1.bf16.msra.mxu0 %v4629_v51  ;;  %v4755_v51 = vld [vmem:[%s6281_s9 + $0x30] sm:$0xff]  }
 0x2dc   :  { %3191 = vmatprep.subr.bf16.mxu0 %v4637_v52  ;;  %v4756_v52 = vld [vmem:[%s6281_s9 + $0x68] sm:$0xff]  }
 0x2df   :  { %3192 = vmatpush1.bf16.msra.mxu0 %v4635_v53  ;;  %v4716_v53 = vld [vmem:[%s6279_s7 + $0x268] ss:$16 sps:$4 sm:$0xff]  }
 0x2e0   :  { %3193 = vmatprep.subr.bf16.mxu0 %v4643_v54  ;;  %v4721_v54 = vld [vmem:[%s6279_s7 + $0x24c] ss:$16 sps:$4 sm:$0xff]  }
 0x2e3   :  { %3194 = vmatpush1.bf16.msra.mxu0 %v4641_v55  ;;  %v4719_v55 = vld [vmem:[%s6279_s7 + $0x248] ss:$16 sps:$4 sm:$0xff]  }
 0x2e4   :  { %3195 = vmatprep.subr.bf16.mxu0 %v4649_v56  ;;  %v4757_v56 = vld [vmem:[%s6281_s9 + $0x28] sm:$0xff]  }
 0x2e7   :  { %3196 = vmatpush1.bf16.msra.mxu0 %v4647_v57  ;;  %v4724_v57 = vld [vmem:[%s6279_s7 + $0x22c] ss:$16 sps:$4 sm:$0xff]  }
 0x2e8   :  { %3197 = vmatprep.subr.bf16.mxu0 %v4655_v58  ;;  %v4758_v58 = vld [vmem:[%s6281_s9 + $0x60] sm:$0xff]  }
 0x2eb   :  { %3198 = vmatpush1.bf16.msra.mxu0 %v4653_v59  ;;  %v4759_v59 = vld [vmem:[%s6281_s9 + $0x20] sm:$0xff]  }
 0x2ec   :  { %3199 = vmatprep.subr.bf16.mxu0 %v4661_v60  ;;  %v4760_v60 = vld [vmem:[%s6281_s9 + $0x58] sm:$0xff]  }
 0x2ef   :  { %3200 = vmatpush2.bf16.msra.mxu0 %v4659_v61  ;;  %v4722_v61 = vld [vmem:[%s6279_s7 + $0x228] ss:$16 sps:$4 sm:$0xff]  }
 0x2f0   :  { %3201 = vmatprep.subr.bf16.mxu0 %v4667_v62  ;;  %v4727_v62 = vld [vmem:[%s6279_s7 + $0x20c] ss:$16 sps:$4 sm:$0xff]  }
 0x2f3   :  { %3202 = vmatpush2.bf16.msra.mxu0 %v4665_v63  ;;  %v4761_v63 = vld [vmem:[%s6281_s9 + $0x18] sm:$0xff]  }
 0x2f4   :  { %3203 = vmatprep.subr.bf16.mxu0 %v4673_v0  ;;  %v4725_v0 = vld [vmem:[%s6279_s7 + $0x208] ss:$16 sps:$4 sm:$0xff]  }
 0x2f7   :  { %3204 = vmatpush2.bf16.msra.mxu0 %v4671_v1  ;;  %v4730_v1 = vld [vmem:[%s6279_s7 + $0x3ec] ss:$16 sps:$4 sm:$0xff]  }
 0x2f8   :  { %3205 = vmatprep.subr.bf16.mxu0 %v4679_v2  ;;  %v4728_v2 = vld [vmem:[%s6279_s7 + $0x3e8] ss:$16 sps:$4 sm:$0xff]  }
 0x2fb   :  { %3206 = vmatpush2.bf16.msra.mxu0 %v4677_v4  ;;  %v4731_v4 = vld [vmem:[%s6279_s7 + $0x3c8] ss:$16 sps:$4 sm:$0xff]  }
 0x2fc   :  { %3207 = vmatprep.subr.bf16.mxu0 %v4685_v5  ;;  %v4736_v5 = vld [vmem:[%s6279_s7 + $0x3ac] ss:$16 sps:$4 sm:$0xff]  }
 0x2ff   :  { %3208 = vmatpush2.bf16.msra.mxu0 %v4683_v7  ;;  %v4739_v7 = vld [vmem:[%s6279_s7 + $0x38c] ss:$16 sps:$4 sm:$0xff]  }
 0x300   :  { %v2286_v15 = vpop.f32.mrf.mxu1  ;;  %3209 = vmatprep.subr.bf16.mxu0 %v4691_v8  ;;  %v4737_v8 = vld [vmem:[%s6279_s7 + $0x388] ss:$16 sps:$4 sm:$0xff]  }
 0x301   :  { %v2287_v26 = vadd.f32 %v2286_v15, %v2244_v22  ;;  %v4748_v15 = vld [vmem:[%s6279_s7 + $0x32c] ss:$16 sps:$4 sm:$0xff]  }
 0x302   :  { %v2288_v18 = vpop.f32.mrf.mxu1  ;;  %v4765_v22 = vld [vmem:[%s6281_s9 + $0x8] sm:$0xff]  }
 0x303   :  { %3210 = vmatpush2.bf16.msra.mxu0 %v4689_v13  ;;  %v2289_v24 = vadd.f32 %v2288_v18, %v2246_v19  ;;  %v2297_v33 = vmax.f32 %v2287_v26, 0.0  ;;  %v4745_v13 = vld [vmem:[%s6279_s7 + $0x34c] ss:$16 sps:$4 sm:$0xff]   ;;  %v4749_v18 = vld [vmem:[%s6279_s7 + $0x308] ss:$16 sps:$4 sm:$0xff]   ;;  %v4762_v19 = vld [vmem:[%s6281_s9 + $0x50] sm:$0xff]  }
 0x304   :  { %v2290_v23 = vpop.f32.mrf.mxu1  ;;  %3211 = vmatprep.subr.bf16.mxu0 %v4697_v16  ;;  %v4746_v16 = vld [vmem:[%s6279_s7 + $0x328] ss:$16 sps:$4 sm:$0xff]   ;;  %v4771_v26 = vld [vmem:[%s6281_s9 + $0xb0] sm:$0xff]  }
 0x305   :  { %v2291_v25 = vadd.f32 %v2290_v23, %v2248_v12  ;;  %v2298_v31 = vmax.f32 %v2289_v24, 0.0  ;;  %v4763_v12 = vld [vmem:[%s6281_s9 + $0x10] sm:$0xff]   ;;  %v4766_v23 = vld [vmem:[%s6281_s9 + $0x40] sm:$0xff]   ;;  %v4769_v24 = vld [vmem:[%s6281_s9 + $0xb8] sm:$0xff]  }
 0x306   :  { %v2292_v27 = vpop.f32.mrf.mxu1 }
 0x307   :  { %v2293_v28 = vadd.f32 %v2292_v27, %v2250_v11  ;;  %3212 = vmatpush2.bf16.msra.mxu0 %v4695_v21  ;;  %v2301_v30 = vmax.f32 %v2291_v25, 0.0  ;;  %v4764_v21 = vld [vmem:[%s6281_s9 + $0x48] sm:$0xff]   ;;  %v4768_v11 = vld [vmem:[%s6281_s9 + $0xf8] sm:$0xff]   ;;  %v4770_v25 = vld [vmem:[%s6281_s9 + $0xf0] sm:$0xff]  }
 0x308   :  { %3213 = vmatprep.subr.bf16.mxu0 %v4703_v20  ;;  %v4767_v20 = vld [vmem:[%s6281_s9] sm:$0xff]   ;;  %v4772_v27 = vld [vmem:[%s6281_s9 + $0xe8] sm:$0xff]  }
 0x309   :  { %v2302_v32 = vmax.f32 %v2293_v28, 0.0  ;;  %v6066_v36 = vpack.c.bf16 %v2301_v30, %v2297_v33  ;;  %v4773_v28 = vld [vmem:[%s6281_s9 + $0xa8] sm:$0xff]   ;;  %v4775_v30 = vld [vmem:[%s6281_s9 + $0xa0] sm:$0xff]   ;;  %v4778_v33 = vld [vmem:[%s6281_s9 + $0xd0] sm:$0xff]  }
 0x30b   :  { %v2306_v34 = vpack.c.bf16 %v2302_v32, %v2298_v31  ;;  %3214 = vmatpush2.bf16.msra.mxu0 %v4701_v29  ;;  %v4774_v29 = vld [vmem:[%s6281_s9 + $0xe0] sm:$0xff]   ;;  %v4776_v31 = vld [vmem:[%s6281_s9 + $0xd8] sm:$0xff]  }
 0x30c   :  { %4082 = vmatprep.subr.bf16.mxu0 %v4752_v48  ;;  %v4777_v32 = vld [vmem:[%s6281_s9 + $0x98] sm:$0xff]  }
 0x30d   :  { %3172 = vmatprep.mubr.bf16.mxu1 %v2306_v34 }
 0x30e   :  { %3173 = vmatmul.mubr.bf16.vlgmr.msra.gmra.mxu1 %v6066_v36  ;;  %3216 = vmatmul.mubr.bf16.vlgmr.msra.gmra.mxu0 %v5966_v45  ;;  %v4715_v45 = vld [vmem:[%s6279_s7 + $0x28c] ss:$16 sps:$4 sm:$0xff]  }
 0x30f   :  { %3227 = vmatpush1.bf16.msra.mxu1 %v4704_v35  ;;  %3258 = vmatprep.mubr.bf16.mxu1 %v2306_v34  ;;  %v4779_v34 = vld [vmem:[%s6281_s9 + $0x90] sm:$0xff]   ;;  %v4780_v35 = vld [vmem:[%s6281_s9 + $0xc8] sm:$0xff]  }
 0x310   :  { %3228 = vmatprep.subr.bf16.mxu1 %v4709_v37  ;;  %4083 = vmatpush3.bf16.msra.mxu0 %v4753_v49  ;;  %v4782_v37 = vld [vmem:[%s6281_s9 + $0xc0] sm:$0xff]  }
 0x311   :  { %4084 = vmatprep.subr.bf16.mxu0 %v4754_v50 }
 0x313   :  { %3229 = vmatpush1.bf16.msra.mxu1 %v4707_v38  ;;  %v4783_v38 = vld [vmem:[%s6281_s9 + $0x80] sm:$0xff]  }
 0x314   :  { %3230 = vmatprep.subr.bf16.mxu1 %v4712_v44  ;;  %4085 = vmatpush3.bf16.msra.mxu0 %v4755_v51 }
 0x315   :  { %4086 = vmatprep.subr.bf16.mxu0 %v4756_v52 }
 0x317   :  { %3231 = vmatpush1.bf16.msra.mxu1 %v4710_v43 }
 0x318   :  { %3232 = vmatprep.subr.bf16.mxu1 %v4715_v45  ;;  %4087 = vmatpush3.bf16.msra.mxu0 %v4757_v56  ;;  %v2435_v45 = vld [vmem:[%s6282_s8] sm:$0xf] }
 0x319   :  { %4088 = vmatprep.subr.bf16.mxu0 %v4758_v58  ;;  %v2440_v48 = vrot.slane %v2435_v45, %v5149_v41 }
 0x31b   :  { %3233 = vmatpush1.bf16.msra.mxu1 %v4713_v46 }
 0x31c   :  { %3234 = vmatprep.subr.bf16.mxu1 %v4718_v47  ;;  %4089 = vmatpush3.bf16.msra.mxu0 %v4759_v59  ;;  %v2444_v47 = vrot.slane %v2435_v45, %v5145_v39 }
 0x31d   :  { %4090 = vmatprep.subr.bf16.mxu0 %v4760_v60 }
 0x31f   :  { %3235 = vmatpush1.bf16.msra.mxu1 %v4716_v53 }
 0x320   :  { %3236 = vmatprep.subr.bf16.mxu1 %v4721_v54  ;;  %4091 = vmatpush3.bf16.msra.mxu0 %v4761_v63 }
 0x321   :  { %4092 = vmatprep.subr.bf16.mxu0 %v4762_v19 }
 0x323   :  { %3237 = vmatpush1.bf16.msra.mxu1 %v4719_v55 }
 0x324   :  { %3238 = vmatprep.subr.bf16.mxu1 %v4724_v57  ;;  %4093 = vmatpush3.bf16.msra.mxu0 %v4763_v12 }
 0x325   :  { %4094 = vmatprep.subr.bf16.mxu0 %v4764_v21 }
 0x327   :  { %3239 = vmatpush1.bf16.msra.mxu1 %v4722_v61 }
 0x328   :  { %3240 = vmatprep.subr.bf16.mxu1 %v4727_v62  ;;  %4095 = vmatpush3.bf16.msra.mxu0 %v4765_v22 }
 0x329   :  { %4096 = vmatprep.subr.bf16.mxu0 %v4766_v23 }
 0x32b   :  { %3241 = vmatpush1.bf16.msra.mxu1 %v4725_v0 }
 0x32c   :  { %3242 = vmatprep.subr.bf16.mxu1 %v4730_v1  ;;  %4097 = vmatpush3.bf16.msra.mxu0 %v4767_v20 }
 0x32f   :  { %3243 = vmatpush2.bf16.msra.mxu1 %v4728_v2 }
 0x330   :  { %3244 = vmatprep.subr.bf16.mxu1 %v4733_v3 }
 0x333   :  { %3245 = vmatpush2.bf16.msra.mxu1 %v4731_v4 }
 0x334   :  { %3246 = vmatprep.subr.bf16.mxu1 %v4736_v5  ;;  %v2452_v5 = vrot.slane %v2435_v45, %v5147_v40 }
 0x337   :  { %3247 = vmatpush2.bf16.msra.mxu1 %v4734_v6  ;;  %v2448_v6 = vrot.slane %v2435_v45, %v5151_v42 }
 0x338   :  { %3248 = vmatprep.subr.bf16.mxu1 %v4739_v7 }
 0x33b   :  { %3249 = vmatpush2.bf16.msra.mxu1 %v4737_v8 }
 0x33c   :  { %3250 = vmatprep.subr.bf16.mxu1 %v4742_v9 }
 0x33f   :  { %3251 = vmatpush2.bf16.msra.mxu1 %v4740_v10 }
 0x340   :  { %3252 = vmatprep.subr.bf16.mxu1 %v4745_v13 }
 0x343   :  { %3253 = vmatpush2.bf16.msra.mxu1 %v4743_v14 }
 0x344   :  { %3254 = vmatprep.subr.bf16.mxu1 %v4748_v15 }
 0x347   :  { %3255 = vmatpush2.bf16.msra.mxu1 %v4746_v16 }
 0x348   :  { %3256 = vmatprep.subr.bf16.mxu1 %v4751_v17 }
 0x34b   :  { %3257 = vmatpush2.bf16.msra.mxu1 %v4749_v18 }
 0x34c   :  { %4104 = vmatprep.subr.bf16.mxu1 %v4768_v11 }
 0x34e   :  { %3259 = vmatmul.mubr.bf16.vlgmr.msra.gmra.mxu1 %v6066_v36  ;;  %v4781_v36 = vld [vmem:[%s6281_s9 + $0x88] sm:$0xff]  }
 0x34f   :  { %4105 = vmatpush3.bf16.msra.mxu1 %v4769_v24 }
 0x350   :  { %4106 = vmatprep.subr.bf16.mxu1 %v4770_v25 }
 0x353   :  { %4107 = vmatpush3.bf16.msra.mxu1 %v4771_v26 }
 0x354   :  { %4108 = vmatprep.subr.bf16.mxu1 %v4772_v27 }
 0x357   :  { %4109 = vmatpush3.bf16.msra.mxu1 %v4773_v28  ;;  %v4049_v28 = vld [vmem:[%s6283_s10] ss:$0 sm:$0xff] }
 0x358   :  { %4110 = vmatprep.subr.bf16.mxu1 %v4774_v29 }
 0x35b   :  { %4111 = vmatpush3.bf16.msra.mxu1 %v4775_v30 }
 0x35c   :  { %4112 = vmatprep.subr.bf16.mxu1 %v4776_v31 }
 0x35f   :  { %4113 = vmatpush3.bf16.msra.mxu1 %v4777_v32 }
 0x360   :  { %4114 = vmatprep.subr.bf16.mxu1 %v4778_v33 }
 0x363   :  { %4115 = vmatpush3.bf16.msra.mxu1 %v4779_v34 }
 0x364   :  { %4116 = vmatprep.subr.bf16.mxu1 %v4780_v35 }
 0x367   :  { %4117 = vmatpush3.bf16.msra.mxu1 %v4781_v36 }
 0x368   :  { %4118 = vmatprep.subr.bf16.mxu1 %v4782_v37 }
 0x36b   :  { %4119 = vmatpush3.bf16.msra.mxu1 %v4783_v38 }
 0x38e   :  { %v3131_v44 = vpop.f32.mrf.mxu0 }
 0x38f   :  { %v3132_v54 = vadd.f32 %v3131_v44, %v2440_v48 }
 0x390   :  { %v3133_v43 = vpop.f32.mrf.mxu0 }
 0x391   :  { %v3134_v52 = vadd.f32 %v3133_v43, %v2444_v47 }
 0x392   :  { %v3135_v46 = vpop.f32.mrf.mxu0 }
 0x393   :  { %v3136_v53 = vadd.f32 %v3135_v46, %v2440_v48 }
 0x394   :  { %v3137_v50 = vpop.f32.mrf.mxu0 }
 0x395   :  { %v3138_v56 = vadd.f32 %v3137_v50, %v2444_v47 }
 0x3ce   :  { %v3174_v49 = vpop.f32.mrf.mxu1  ;;  %v3217_v41 = vpop.f32.mrf.mxu0 }
 0x3cf   :  { %v3175_v59 = vadd.f32 %v3174_v49, %v3132_v54  ;;  %v3218_v14 = vadd.f32 %v3217_v41, %v2448_v6 }
 0x3d0   :  { %v3176_v51 = vpop.f32.mrf.mxu1  ;;  %v3219_v3 = vpop.f32.mrf.mxu0 }
 0x3d1   :  { %v3177_v57 = vadd.f32 %v3176_v51, %v3134_v52  ;;  %v3269_v1 = vmax.f32 %v3175_v59, 0.0  ;;  %v3220_v10 = vadd.f32 %v3219_v3, %v2452_v5 }
 0x3d2   :  { %v3178_v55 = vpop.f32.mrf.mxu1  ;;  %v3221_v4 = vpop.f32.mrf.mxu0 }
 0x3d3   :  { %v3179_v58 = vadd.f32 %v3178_v55, %v3136_v53  ;;  %v3270_v63 = vmax.f32 %v3177_v57, 0.0  ;;  %v3222_v13 = vadd.f32 %v3221_v4, %v2448_v6 }
 0x3d4   :  { %v3180_v60 = vpop.f32.mrf.mxu1  ;;  %v3223_v8 = vpop.f32.mrf.mxu0 }
 0x3d5   :  { %v3181_v61 = vadd.f32 %v3180_v60, %v3138_v56  ;;  %v3273_v62 = vmax.f32 %v3179_v58, 0.0  ;;  %v3224_v16 = vadd.f32 %v3223_v8, %v2452_v5 }
 0x3d7   :  { %v3274_v0 = vmax.f32 %v3181_v61, 0.0  ;;  %v3277_v2 = vpack.c.bf16 %v3273_v62, %v3269_v1 }
 0x3d9   :  { %v3278_v39 = vpack.c.bf16 %v3274_v0, %v3270_v63 }
 0x3db   :  { %3576 = vmatprep.mubr.bf16.mxu0 %v3278_v39 }
 0x3dc   :  { %3577 = vmatmul.mubr.bf16.vlgmr.msra.gmra.mxu0 %v3277_v2 }
 0x40e   :  { %v3260_v7 = vpop.f32.mrf.mxu1 }
 0x40f   :  { %v3261_v19 = vadd.f32 %v3260_v7, %v3218_v14 }
 0x410   :  { %v3262_v9 = vpop.f32.mrf.mxu1 }
 0x411   :  { %v3263_v17 = vadd.f32 %v3262_v9, %v3220_v10  ;;  %v3271_v11 = vmax.f32 %v3261_v19, 0.0 }
 0x412   :  { %v3264_v15 = vpop.f32.mrf.mxu1 }
 0x413   :  { %v3265_v18 = vadd.f32 %v3264_v15, %v3222_v13  ;;  %v3272_v23 = vmax.f32 %v3263_v17, 0.0 }
 0x414   :  { %v3266_v12 = vpop.f32.mrf.mxu1 }
 0x415   :  { %v3267_v21 = vadd.f32 %v3266_v12, %v3224_v16  ;;  %v3275_v22 = vmax.f32 %v3265_v18, 0.0 }
 0x417   :  { %v3276_v20 = vmax.f32 %v3267_v21, 0.0  ;;  %v3279_v24 = vpack.c.bf16 %v3275_v22, %v3271_v11 }
 0x419   :  { %v3280_v40 = vpack.c.bf16 %v3276_v20, %v3272_v23 }
 0x41b   :  { %3617 = vmatprep.mubr.bf16.mxu1 %v3280_v40 }
 0x41c   :  { %3618 = vmatmul.mubr.bf16.vlgmr.msra.gmra.mxu1 %v3279_v24 }
 0x49c   :  { %v4098_v42 = vpop.f32.mrf.mxu0 }
 0x49e   :  { %v4099_v25 = vpop.f32.mrf.mxu0 }
 0x49f   :  { %v4100_v27 = vadd.f32 %v4099_v25, %v4098_v42 }
 0x4a0   :  { %v4101_v26 = vpop.f32.mrf.mxu0 }
 0x4a1   :  { %v3579_v32 = vadd.f32 %v4100_v27, %v4049_v28 }
 0x4a2   :  { %v4102_v29 = vpop.f32.mrf.mxu0 }
 0x4a3   :  { %v4103_v33 = vadd.f32 %v4102_v29, %v4101_v26 }
 0x4a5   :  { %v3582_v38 = vadd.f32 %v4103_v33, %v4049_v28 }
 0x4dc   :  { %v4120_v30 = vpop.f32.mrf.mxu1 }
 0x4de   :  { %v4121_v31 = vpop.f32.mrf.mxu1 }
 0x4df   :  { %v4122_v34 = vadd.f32 %v4121_v31, %v4120_v30 }
 0x4e0   :  { %v4123_v35 = vpop.f32.mrf.mxu1 }
 0x4e1   :  { %v3620_v36 = vadd.f32 %v4122_v34, %v3579_v32 }
 0x4e2   :  { %v4124_v37 = vpop.f32.mrf.mxu1 }
 0x4e3   :  { %3626 = vst [vmem:[%s6284_s11] sm:$0xff] %v3620_v36  ;;  %v4125_v44 = vadd.f32 %v4124_v37, %v4123_v35 }
 0x4e5   :  { %v3623_v43 = vadd.f32 %v4125_v44, %v3582_v38 }
 0x4e7   :  { %3627 = vst [vmem:[%s6284_s11 + $0x8] sm:$0xff] %v3623_v43 }

</bundles_post_ra>
